<compile_context>
chip_gen: v5e
topology: v5e:2x2
jax: 0.10.0
libtpu: 0.0.40
codegen_flags: <defaults>
</compile_context>

<pallas_src>
import numpy as np
import jax
import jax.numpy as jnp
from jax.experimental import pallas as pl
from jax.experimental.pallas import tpu as pltpu

H = W = 28
FEAT = H * W            # 784
INIT_SIZE = 2 * FEAT    # 1568  (adopt_concat=True)
HID1, HID2, OUT = 300, 100, 10

# Lane-aligned (multiple of 128) padded dims.
K_PAD = 896             # 784 -> 7*128
H1_PAD = 384            # 300 -> 3*128
H2_PAD = 128            # 100 -> 128
OUT_PAD = 128           # 10  -> 128


def _round_up(n, m):
    return (n + m - 1) // m * m


def _gaussian_blur_matrix() -> np.ndarray:
    """784x784 matrix G such that (x_flat @ G) == 3x3 gaussian blur (same pad)."""
    k = np.array([[1., 2., 1.],
                  [2., 4., 2.],
                  [1., 2., 1.]], dtype=np.float32) / 16.0
    G = np.zeros((FEAT, FEAT), dtype=np.float32)
    for r in range(H):
        for c in range(W):
            o = r * W + c
            for i in range(3):
                for j in range(3):
                    rr, cc = r + i - 1, c + j - 1
                    if 0 <= rr < H and 0 <= cc < W:
                        G[rr * W + cc, o] = k[i, j]
    return G


# Built once at module load; only used at parameter-prep time (never DMA'd).
_G = _gaussian_blur_matrix()


def drgm_kernel(x_ref, w1_ref, b1_ref, w2_ref, b2_ref, w3_ref, b3_ref, o_ref):
    # x_ref: (TB, K_PAD) bf16. Weights bf16, biases f32, output f32.
    x = x_ref[...]

    # fc1 (blur already folded into w1): f32 accumulation on the MXU.
    h1 = jnp.dot(x, w1_ref[...], preferred_element_type=jnp.float32) + b1_ref[...]
    h1 = jnp.maximum(h1, 0.0).astype(jnp.bfloat16)

    # fc2
    h2 = jnp.dot(h1, w2_ref[...], preferred_element_type=jnp.float32) + b2_ref[...]
    h2 = jnp.maximum(h2, 0.0).astype(jnp.bfloat16)

    # fc3 (output stays f32, lane-dense OUT_PAD=128 store)
    o_ref[...] = (jnp.dot(h2, w3_ref[...], preferred_element_type=jnp.float32)
                  + b3_ref[...])


def init_params(key):
    """Deterministic PyTorch-Linear-style init: U(-1/sqrt(fan_in), +1/sqrt(fan_in))."""
    ks = jax.random.split(key, 6)

    def lin(kw, kb, fan_in, fan_out):
        bound = 1.0 / np.sqrt(fan_in)
        w = jax.random.uniform(kw, (fan_in, fan_out), jnp.float32, -bound, bound)
        b = jax.random.uniform(kb, (1, fan_out), jnp.float32, -bound, bound)
        return w, b

    w1, b1 = lin(ks[0], ks[1], INIT_SIZE, HID1)   # fc1: 1568 -> 300
    w2, b2 = lin(ks[2], ks[3], HID1, HID2)        # fc2: 300  -> 100
    w3, b3 = lin(ks[4], ks[5], HID2, OUT)         # fc3: 100  -> 10
    # split fc1 weight: rows [0:784] act on x, rows [784:1568] act on blur(x)
    w1a, w1b = w1[:FEAT], w1[FEAT:]
    return w1a, w1b, b1, w2, b2, w3, b3


def prepare_params(params):
    """Fold the blur into fc1, zero-pad to lane multiples, cast weights to bf16."""
    w1a, w1b, b1, w2, b2, w3, b3 = params
    g = jnp.asarray(_G)
    w1_eff = w1a + g @ w1b                        # (784, 300): blur folded into fc1

    def pad2(a, r, c):
        return jnp.zeros((r, c), a.dtype).at[:a.shape[0], :a.shape[1]].set(a)

    w1p = pad2(w1_eff, K_PAD, H1_PAD).astype(jnp.bfloat16)
    w2p = pad2(w2, H1_PAD, H2_PAD).astype(jnp.bfloat16)
    w3p = pad2(w3, H2_PAD, OUT_PAD).astype(jnp.bfloat16)
    b1p = pad2(b1, 1, H1_PAD)                     # biases stay f32
    b2p = pad2(b2, 1, H2_PAD)
    b3p = pad2(b3, 1, OUT_PAD)
    return w1p, b1p, w2p, b2p, w3p, b3p


def drgm_forward(x_nchw, kernel_params):
    B = x_nchw.shape[0]
    # Batch tile: multiple of 8, capped at 256; pad batch to a multiple of TB.
    TB = min(256, _round_up(max(B, 8), 8))
    B_pad = _round_up(B, TB)

    x_flat = x_nchw.reshape(B, FEAT)                       # glue: NCHW -> (B, 784)
    x_pad = (jnp.zeros((B_pad, K_PAD), jnp.bfloat16)
             .at[:B, :FEAT].set(x_flat.astype(jnp.bfloat16)))

    w1p, b1p, w2p, b2p, w3p, b3p = kernel_params

    def wspec(shape):  # weights/biases: resident across the batch grid
        return pl.BlockSpec(shape, lambda i: (0, 0))

    out = pl.pallas_call(
        drgm_kernel,
        out_shape=jax.ShapeDtypeStruct((B_pad, OUT_PAD), jnp.float32),
        grid=(B_pad // TB,),
        in_specs=[
            pl.BlockSpec((TB, K_PAD), lambda i: (i, 0)),   # x tile, pipelined
            wspec((K_PAD, H1_PAD)), wspec((1, H1_PAD)),
            wspec((H1_PAD, H2_PAD)), wspec((1, H2_PAD)),
            wspec((H2_PAD, OUT_PAD)), wspec((1, OUT_PAD)),
        ],
        out_specs=pl.BlockSpec((TB, OUT_PAD), lambda i: (i, 0)),
        compiler_params=pltpu.CompilerParams(
            dimension_semantics=("parallel",),             # megacore on v7x
            vmem_limit_bytes=32 << 20),
    )(x_pad, w1p, b1p, w2p, b2p, w3p, b3p)

    return out[:B, :OUT]


if __name__ == "__main__":
    key = jax.random.PRNGKey(0)
    k_x, k_p = jax.random.split(key)

    # Small deterministic input consistent with the module: MNIST-like NCHW.
    x = jax.random.normal(k_x, (2, 1, 28, 28), dtype=jnp.float32)
    params = init_params(k_p)
    kernel_params = prepare_params(params)

    out = drgm_forward(x, kernel_params)
    out = jax.block_until_ready(out)
    assert out.shape == (2, 10) and out.dtype == jnp.float32
    print("KERNEL_OK")
</pallas_src>

<mosaic_0001>
module attributes {stable_mosaic.version = 11 : i64} {
  func.func @drgm_kernel(%arg0: i32, %arg1: memref<8x896xbf16, #tpu.memory_space<vmem>>, %arg2: memref<896x384xbf16, #tpu.memory_space<vmem>>, %arg3: memref<1x384xf32, #tpu.memory_space<vmem>>, %arg4: memref<384x128xbf16, #tpu.memory_space<vmem>>, %arg5: memref<1x128xf32, #tpu.memory_space<vmem>>, %arg6: memref<128x128xbf16, #tpu.memory_space<vmem>>, %arg7: memref<1x128xf32, #tpu.memory_space<vmem>>, %arg8: memref<8x128xf32, #tpu.memory_space<vmem>>) attributes {dimension_semantics = [#tpu.dimension_semantics<parallel>], iteration_bounds = array<i64: 1>, scalar_prefetch = 0 : i64, scratch_operands = 0 : i64, tpu.core_type = #tpu.core_type<tc>, window_params = [{transform_indices = @transform_0, window_bounds = array<i64: 8, 896>}, {pipeline_mode = #tpu.pipeline_mode<synchronous>, transform_indices = @transform_1, window_bounds = array<i64: 896, 384>}, {pipeline_mode = #tpu.pipeline_mode<synchronous>, transform_indices = @transform_2, window_bounds = array<i64: 1, 384>}, {pipeline_mode = #tpu.pipeline_mode<synchronous>, transform_indices = @transform_3, window_bounds = array<i64: 384, 128>}, {pipeline_mode = #tpu.pipeline_mode<synchronous>, transform_indices = @transform_4, window_bounds = array<i64: 1, 128>}, {pipeline_mode = #tpu.pipeline_mode<synchronous>, transform_indices = @transform_5, window_bounds = array<i64: 128, 128>}, {pipeline_mode = #tpu.pipeline_mode<synchronous>, transform_indices = @transform_6, window_bounds = array<i64: 1, 128>}, {transform_indices = @transform_7, window_bounds = array<i64: 8, 128>}]} {
    %c0 = arith.constant 0 : index
    %c0_0 = arith.constant 0 : index
    %0 = vector.load %arg1[%c0, %c0_0] : memref<8x896xbf16, #tpu.memory_space<vmem>>, vector<8x896xbf16>
    %c0_1 = arith.constant 0 : index
    %c0_2 = arith.constant 0 : index
    %1 = vector.load %arg2[%c0_1, %c0_2] : memref<896x384xbf16, #tpu.memory_space<vmem>>, vector<896x384xbf16>
    %cst = arith.constant dense<0.000000e+00> : vector<8x384xf32>
    %2 = tpu.matmul %0, %1, %cst {dimension_numbers = #tpu.dot_dimension_numbers<[1], [0], [0], [1], [0, 0, 1, 1], [], []>} : vector<8x896xbf16>, vector<896x384xbf16>, vector<8x384xf32> -> vector<8x384xf32>
    %c0_3 = arith.constant 0 : index
    %c0_4 = arith.constant 0 : index
    %3 = vector.load %arg3[%c0_3, %c0_4] : memref<1x384xf32, #tpu.memory_space<vmem>>, vector<1x384xf32>
    %4 = vector.broadcast %3 : vector<1x384xf32> to vector<8x384xf32>
    %5 = arith.addf %2, %4 : vector<8x384xf32>
    %cst_5 = arith.constant 0.000000e+00 : f32
    %6 = vector.broadcast %cst_5 : f32 to vector<8x384xf32>
    %7 = arith.maximumf %5, %6 : vector<8x384xf32>
    %8 = arith.truncf %7 : vector<8x384xf32> to vector<8x384xbf16>
    %c0_6 = arith.constant 0 : index
    %c0_7 = arith.constant 0 : index
    %9 = vector.load %arg4[%c0_6, %c0_7] : memref<384x128xbf16, #tpu.memory_space<vmem>>, vector<384x128xbf16>
    %cst_8 = arith.constant dense<0.000000e+00> : vector<8x128xf32>
    %10 = tpu.matmul %8, %9, %cst_8 {dimension_numbers = #tpu.dot_dimension_numbers<[1], [0], [0], [1], [0, 0, 1, 1], [], []>} : vector<8x384xbf16>, vector<384x128xbf16>, vector<8x128xf32> -> vector<8x128xf32>
    %c0_9 = arith.constant 0 : index
    %c0_10 = arith.constant 0 : index
    %11 = vector.load %arg5[%c0_9, %c0_10] : memref<1x128xf32, #tpu.memory_space<vmem>>, vector<1x128xf32>
    %12 = vector.broadcast %11 : vector<1x128xf32> to vector<8x128xf32>
    %13 = arith.addf %10, %12 : vector<8x128xf32>
    %cst_11 = arith.constant 0.000000e+00 : f32
    %14 = vector.broadcast %cst_11 : f32 to vector<8x128xf32>
    %15 = arith.maximumf %13, %14 : vector<8x128xf32>
    %16 = arith.truncf %15 : vector<8x128xf32> to vector<8x128xbf16>
    %c0_12 = arith.constant 0 : index
    %c0_13 = arith.constant 0 : index
    %17 = vector.load %arg6[%c0_12, %c0_13] : memref<128x128xbf16, #tpu.memory_space<vmem>>, vector<128x128xbf16>
    %cst_14 = arith.constant dense<0.000000e+00> : vector<8x128xf32>
    %18 = tpu.matmul %16, %17, %cst_14 {dimension_numbers = #tpu.dot_dimension_numbers<[1], [0], [0], [1], [0, 0, 1, 1], [], []>} : vector<8x128xbf16>, vector<128x128xbf16>, vector<8x128xf32> -> vector<8x128xf32>
    %c0_15 = arith.constant 0 : index
    %c0_16 = arith.constant 0 : index
    %19 = vector.load %arg7[%c0_15, %c0_16] : memref<1x128xf32, #tpu.memory_space<vmem>>, vector<1x128xf32>
    %20 = vector.broadcast %19 : vector<1x128xf32> to vector<8x128xf32>
    %21 = arith.addf %18, %20 : vector<8x128xf32>
    %c0_17 = arith.constant 0 : index
    %c0_18 = arith.constant 0 : index
    %22 = vector.load %arg8[%c0_17, %c0_18] : memref<8x128xf32, #tpu.memory_space<vmem>>, vector<8x128xf32>
    tpu.vector_store %arg8[%c0_17, %c0_18], %21 {strides = array<i32>} : memref<8x128xf32, #tpu.memory_space<vmem>>, vector<8x128xf32>,
    return
  }
  func.func @transform_0(%arg0: i32) -> (i32, i32) {
    %c0_i32 = arith.constant 0 : i32
    %c0_i32_0 = arith.constant 0 : i32
    return %arg0, %c0_i32 : i32, i32
  }
  func.func @transform_1(%arg0: i32) -> (i32, i32) {
    %c0_i32 = arith.constant 0 : i32
    %c0_i32_0 = arith.constant 0 : i32
    %c0_i32_1 = arith.constant 0 : i32
    return %c0_i32, %c0_i32_0 : i32, i32
  }
  func.func @transform_2(%arg0: i32) -> (i32, i32) {
    %c0_i32 = arith.constant 0 : i32
    %c0_i32_0 = arith.constant 0 : i32
    %c0_i32_1 = arith.constant 0 : i32
    return %c0_i32, %c0_i32_0 : i32, i32
  }
  func.func @transform_3(%arg0: i32) -> (i32, i32) {
    %c0_i32 = arith.constant 0 : i32
    %c0_i32_0 = arith.constant 0 : i32
    %c0_i32_1 = arith.constant 0 : i32
    return %c0_i32, %c0_i32_0 : i32, i32
  }
  func.func @transform_4(%arg0: i32) -> (i32, i32) {
    %c0_i32 = arith.constant 0 : i32
    %c0_i32_0 = arith.constant 0 : i32
    %c0_i32_1 = arith.constant 0 : i32
    return %c0_i32, %c0_i32_0 : i32, i32
  }
  func.func @transform_5(%arg0: i32) -> (i32, i32) {
    %c0_i32 = arith.constant 0 : i32
    %c0_i32_0 = arith.constant 0 : i32
    %c0_i32_1 = arith.constant 0 : i32
    return %c0_i32, %c0_i32_0 : i32, i32
  }
  func.func @transform_6(%arg0: i32) -> (i32, i32) {
    %c0_i32 = arith.constant 0 : i32
    %c0_i32_0 = arith.constant 0 : i32
    %c0_i32_1 = arith.constant 0 : i32
    return %c0_i32, %c0_i32_0 : i32, i32
  }
  func.func @transform_7(%arg0: i32) -> (i32, i32) {
    %c0_i32 = arith.constant 0 : i32
    %c0_i32_0 = arith.constant 0 : i32
    return %arg0, %c0_i32 : i32, i32
  }
}

</mosaic_0001>

<bundles_post_ra>
// kernel: tpu_custom_call.1
= control target key start
LH: loop header
LB: loop body
LE: loop exit
PB: predicated region body
PF: predicated region fallthrough
CT: control target
= control target key end

     0   :  { %12 = vsyncpa [#allocation3], 0  ;;  %s3153_s0 = inlined_call_operand.hbm [shape: bf16[8,896], index: 0, kind: input, shape index: {}]   ;;  %s3154_s1 = inlined_call_operand.hbm [shape: bf16[896,384], index: 1, kind: input, shape index: {}]   ;;  %s3155_s2 = inlined_call_operand.hbm [shape: f32[1,384], index: 2, kind: input, shape index: {}]   ;;  %s3156_s3 = inlined_call_operand.hbm [shape: bf16[384,128], index: 3, kind: input, shape index: {}]   ;;  %s3157_s4 = inlined_call_operand.vmem [shape: f32[1,128], index: 4, kind: input, shape index: {}]   ;;  %s3158_s5 = inlined_call_operand.hbm [shape: bf16[128,128], index: 5, kind: input, shape index: {}]   ;;  %s3159_s6 = inlined_call_operand.vmem [shape: f32[1,128], index: 6, kind: input, shape index: {}]   ;;  %s3160_s7 = inlined_call_operand.hbm [shape: f32[8,128], index: 7, kind: output, shape index: {}]  }
   0x1   :  { %13 = vsyncpa [#allocation6], 0 }
   0x2   :  { %14 = vsyncpa [#allocation9], 0  ;;  %s31_s26 = sshll.u32 %s3154_s1, 4  ;;  %s32_s26 = int_to_ptr.hbm [resolvable:$true] %s31_s26 }
   0x3   :  { %15 = vsyncpa [#allocation4], 0  ;;  %s3039_s27 = smov [#allocation5]   ;;  %s55_s8 = sshll.u32 %s3156_s3, 4  ;;  %s56_s8 = int_to_ptr.hbm [resolvable:$true] %s55_s8 }
   0x4   :  { %s33_s28 = sshll.u32 %s3039_s27, 4  ;;  %s3040_s9 = smov 192   ;;  %s34_s28 = int_to_ptr.vmem [resolvable:$true] %s33_s28 }
   0x5   :  { %s3041_s10 = smov 12   ;;  %s3042_s11 = smov [#allocation8]  }
   0x6   :  { %39 = dma.hbm_to_vmem [thread:$0]  %s32_s26, 21504, %s34_s28, [#allocation6], %s3040_s9, %s3040_s9, %s3041_s10  }
   0x7   :  { %s57_s12 = sshll.u32 %s3042_s11, 4  ;;  %s3043_s13 = smov 64   ;;  %s58_s12 = int_to_ptr.vmem [resolvable:$true] %s57_s12 }
   0x8   :  { %s3044_s14 = smov 4   ;;  %s21_s16 = sshll.u32 %s3153_s0, 4  ;;  %s22_s16 = int_to_ptr.hbm [resolvable:$true] %s21_s16 }
   0x9   :  { %63 = dma.hbm_to_vmem [thread:$0]  %s56_s8, 3072, %s58_s12, [#allocation9], %s3043_s13, %s3043_s13, %s3044_s14  }
   0xa   :  { %s3045_s17 = smov [#allocation2]   ;;  %s45_s20 = sshll.u32 %s3155_s2, 4  ;;  %s46_s20 = int_to_ptr.hbm [resolvable:$true] %s45_s20 }
   0xb   :  { %s23_s18 = sshll.u32 %s3045_s17, 4  ;;  %s3046_s21 = smov [#allocation7]   ;;  %s24_s18 = int_to_ptr.vmem [resolvable:$true] %s23_s18 }
   0xc   :  { %26 = dma.hbm_to_vmem [thread:$0]  %s22_s16, 448, %s24_s18, [#allocation3]  }
   0xd   :  { %s47_s22 = sshll.u32 %s3046_s21, 4  ;;  %s70_s25 = sshll.u32 %s3158_s5, 4  ;;  %s48_s22 = int_to_ptr.vmem [resolvable:$true] %s47_s22  ;;  %s71_s25 = int_to_ptr.hbm [resolvable:$true] %s70_s25 }
   0xe   :  { %50 = dma.hbm_to_vmem [thread:$0]  %s46_s20, 48, %s48_s22, [#allocation6]  }
   0xf   :  { %s3047_s0 = smov [#allocation10]  }
  0x10   :  { %s72_s26 = sshll.u32 %s3047_s0, 4  ;;  %s73_s26 = int_to_ptr.vmem [resolvable:$true] %s72_s26 }
  0x11   :  { %78 = dma.hbm_to_vmem [thread:$0]  %s71_s25, 1024, %s73_s26, [#allocation9], %s3043_s13, %s3043_s13, %s3044_s14  }
  0x12   :  { %3031 = dma.done.wait [#allocation3], 448  }
  0x13   :  { %3032 = vsyncadd [#allocation3], 4294966848 }
  0x14   :  { %3033 = dma.done.wait [#allocation6], 21552  }
  0x15   :  { %3034 = vsyncadd [#allocation6], 4294945744 }
  0x16   :  { %3035 = dma.done.wait [#allocation9], 4096  }
  0x17   :  { %3036 = vsyncadd [#allocation9], 4294963200  ;;  %v1961_v0 = vld [vmem:[#allocation5 + $0xa8] sm:$0xf]  ;;  %v2697_v1 = vld [vmem:[#allocation5 + $0xb0] sm:$0xf0] }
  0x18   :  { %v2153_v2 = vld [vmem:[#allocation5 + $0x228] sm:$0xf]  ;;  %v1962_v3 = vor.u32 %v2697_v1, %v1961_v0  ;;  %v2745_v4 = vld [vmem:[#allocation5 + $0x230] sm:$0xf0]  ;;  %v1949_v9 = vld [vmem:[#allocation5 + $0x90] sm:$0xf] }
  0x19   :  { %v2057_v5 = vld [vmem:[#allocation5 + $0x168] sm:$0xf]  ;;  %v2721_v6 = vld [vmem:[#allocation5 + $0x170] sm:$0xf0]  ;;  %v2154_v7 = vor.u32 %v2745_v4, %v2153_v2  ;;  %v2694_v10 = vld [vmem:[#allocation5 + $0x98] sm:$0xf0] }
  0x1a   :  { %v2058_v8 = vor.u32 %v2721_v6, %v2057_v5  ;;  %v2141_v11 = vld [vmem:[#allocation5 + $0x210] sm:$0xf]  ;;  %1258 = vmatpush.bf16.msra.mxu0 %v1962_v3  ;;  %v1950_v12 = vor.u32 %v2694_v10, %v1949_v9  ;;  %v2742_v13 = vld [vmem:[#allocation5 + $0x218] sm:$0xf0]  ;;  %v1937_v18 = vld [vmem:[#allocation5 + $0x78] sm:$0xf] }
  0x1b   :  { %v2045_v14 = vld [vmem:[#allocation5 + $0x150] sm:$0xf]  ;;  %v2718_v15 = vld [vmem:[#allocation5 + $0x158] sm:$0xf0]  ;;  %1284 = vmatpush.bf16.msra.mxu2 %v2154_v7  ;;  %v2142_v16 = vor.u32 %v2742_v13, %v2141_v11  ;;  %v2691_v19 = vld [vmem:[#allocation5 + $0x80] sm:$0xf0] }
  0x1c   :  { %1271 = vmatpush.bf16.msra.mxu1 %v2058_v8  ;;  %v2046_v17 = vor.u32 %v2718_v15, %v2045_v14  ;;  %v2129_v20 = vld [vmem:[#allocation5 + $0x1f8] sm:$0xf]  ;;  %v2739_v21 = vld [vmem:[#allocation5 + $0x200] sm:$0xf0]  ;;  %v1938_v24 = vor.u32 %v2691_v19, %v1937_v18  ;;  %v2249_v25 = vld [vmem:[#allocation5 + $0x2e8] sm:$0xf] }
  0x1d   :  { %v2033_v22 = vld [vmem:[#allocation5 + $0x138] sm:$0xf]  ;;  %v2715_v23 = vld [vmem:[#allocation5 + $0x140] sm:$0xf0]  ;;  %v2769_v26 = vld [vmem:[#allocation5 + $0x2f0] sm:$0xf0]  ;;  %v2130_v27 = vor.u32 %v2739_v21, %v2129_v20 }
  0x1e   :  { %1259 = vmatpush.bf16.msra.mxu0 %v1950_v12  ;;  %v2034_v28 = vor.u32 %v2715_v23, %v2033_v22  ;;  %v1925_v29 = vld [vmem:[#allocation5 + $0x60] sm:$0xf]  ;;  %v2688_v30 = vld [vmem:[#allocation5 + $0x68] sm:$0xf0]  ;;  %v2250_v32 = vor.u32 %v2769_v26, %v2249_v25  ;;  %v2237_v36 = vld [vmem:[#allocation5 + $0x2d0] sm:$0xf] }
  0x1f   :  { %1285 = vmatpush.bf16.msra.mxu2 %v2142_v16  ;;  %v2117_v31 = vld [vmem:[#allocation5 + $0x1e0] sm:$0xf]  ;;  %v2736_v33 = vld [vmem:[#allocation5 + $0x1e8] sm:$0xf0]  ;;  %v2766_v37 = vld [vmem:[#allocation5 + $0x2d8] sm:$0xf0]  ;;  %v1926_v38 = vor.u32 %v2688_v30, %v1925_v29 }
  0x20   :  { %1272 = vmatpush.bf16.msra.mxu1 %v2046_v17  ;;  %v2021_v34 = vld [vmem:[#allocation5 + $0x120] sm:$0xf]  ;;  %v2712_v35 = vld [vmem:[#allocation5 + $0x128] sm:$0xf0]  ;;  %1297 = vmatpush.bf16.msra.mxu3 %v2250_v32  ;;  %v1913_v39 = vld [vmem:[#allocation5 + $0x48] sm:$0xf]  ;;  %v2238_v41 = vor.u32 %v2766_v37, %v2237_v36  ;;  %v2118_v42 = vor.u32 %v2736_v33, %v2117_v31 }
  0x21   :  { %v2685_v40 = vld [vmem:[#allocation5 + $0x50] sm:$0xf0]  ;;  %v2022_v43 = vor.u32 %v2712_v35, %v2021_v34  ;;  %v2105_v44 = vld [vmem:[#allocation5 + $0x1c8] sm:$0xf]  ;;  %v2225_v46 = vld [vmem:[#allocation5 + $0x2b8] sm:$0xf] }
  0x22   :  { %1260 = vmatpush.bf16.msra.mxu0 %v1938_v24  ;;  %v2733_v45 = vld [vmem:[#allocation5 + $0x1d0] sm:$0xf0]  ;;  %v2009_v47 = vld [vmem:[#allocation5 + $0x108] sm:$0xf]  ;;  %v2763_v49 = vld [vmem:[#allocation5 + $0x2c0] sm:$0xf0]  ;;  %v1914_v51 = vor.u32 %v2685_v40, %v1913_v39 }
  0x23   :  { %1286 = vmatpush.bf16.msra.mxu2 %v2130_v27  ;;  %v2709_v48 = vld [vmem:[#allocation5 + $0x110] sm:$0xf0]  ;;  %v2226_v50 = vor.u32 %v2763_v49, %v2225_v46  ;;  %v2213_v52 = vld [vmem:[#allocation5 + $0x2a0] sm:$0xf]  ;;  %v2760_v53 = vld [vmem:[#allocation5 + $0x2a8] sm:$0xf0]  ;;  %v2106_v54 = vor.u32 %v2733_v45, %v2105_v44 }
  0x24   :  { %1273 = vmatpush.bf16.msra.mxu1 %v2034_v28  ;;  %1298 = vmatpush.bf16.msra.mxu3 %v2238_v41  ;;  %v2010_v55 = vor.u32 %v2709_v48, %v2009_v47  ;;  %v1901_v56 = vld [vmem:[#allocation5 + $0x30] sm:$0xf]  ;;  %v2682_v57 = vld [vmem:[#allocation5 + $0x38] sm:$0xf0]  ;;  %v2214_v62 = vor.u32 %v2760_v53, %v2213_v52  ;;  %v2201_v0 = vld [vmem:[#allocation5 + $0x288] sm:$0xf] }
  0x25   :  { %v2093_v58 = vld [vmem:[#allocation5 + $0x1b0] sm:$0xf]  ;;  %v2730_v59 = vld [vmem:[#allocation5 + $0x1b8] sm:$0xf0]  ;;  %v1902_v63 = vor.u32 %v2682_v57, %v1901_v56  ;;  %v2757_v1 = vld [vmem:[#allocation5 + $0x290] sm:$0xf0] }
  0x26   :  { %1261 = vmatpush.bf16.msra.mxu0 %v1926_v38  ;;  %v1997_v60 = vld [vmem:[#allocation5 + $0xf0] sm:$0xf]  ;;  %v2706_v61 = vld [vmem:[#allocation5 + $0xf8] sm:$0xf0]  ;;  %v2094_v2 = vor.u32 %v2730_v59, %v2093_v58  ;;  %v1889_v4 = vld [vmem:[#allocation5 + $0x18] sm:$0xf]  ;;  %v2202_v11 = vor.u32 %v2757_v1, %v2201_v0 }
  0x27   :  { %1287 = vmatpush.bf16.msra.mxu2 %v2118_v42  ;;  %v1998_v3 = vor.u32 %v2706_v61, %v1997_v60  ;;  %v2679_v5 = vld [vmem:[#allocation5 + $0x20] sm:$0xf0]  ;;  %v2081_v6 = vld [vmem:[#allocation5 + $0x198] sm:$0xf]  ;;  %v1877_v10 = vld [vmem:[#allocation5] sm:$0xf] }
  0x28   :  { %1274 = vmatpush.bf16.msra.mxu1 %v2022_v43  ;;  %1299 = vmatpush.bf16.msra.mxu3 %v2226_v50  ;;  %v2727_v7 = vld [vmem:[#allocation5 + $0x1a0] sm:$0xf0]  ;;  %v1985_v8 = vld [vmem:[#allocation5 + $0xd8] sm:$0xf]  ;;  %v1890_v12 = vor.u32 %v2679_v5, %v1889_v4  ;;  %v2676_v13 = vld [vmem:[#allocation5 + $0x8] sm:$0xf0] }
  0x29   :  { %v2703_v9 = vld [vmem:[#allocation5 + $0xe0] sm:$0xf0]  ;;  %v2189_v14 = vld [vmem:[#allocation5 + $0x270] sm:$0xf]  ;;  %v2754_v15 = vld [vmem:[#allocation5 + $0x278] sm:$0xf0]  ;;  %v2082_v16 = vor.u32 %v2727_v7, %v2081_v6  ;;  %v1878_v28 = vor.u32 %v2676_v13, %v1877_v10 }
  0x2a   :  { %1262 = vmatpush.bf16.msra.mxu0 %v1914_v51  ;;  %v1986_v17 = vor.u32 %v2703_v9, %v1985_v8  ;;  %v2069_v18 = vld [vmem:[#allocation5 + $0x180] sm:$0xf]  ;;  %v2724_v19 = vld [vmem:[#allocation5 + $0x188] sm:$0xf0]  ;;  %v2345_v20 = vld [vmem:[#allocation5 + $0x3a8] sm:$0xf]  ;;  %v2190_v27 = vor.u32 %v2754_v15, %v2189_v14 }
  0x2b   :  { %1288 = vmatpush.bf16.msra.mxu2 %v2106_v54  ;;  %v2793_v21 = vld [vmem:[#allocation5 + $0x3b0] sm:$0xf0]  ;;  %v2537_v22 = vld [vmem:[#allocation5 + $0x528] sm:$0xf]  ;;  %v1973_v24 = vld [vmem:[#allocation5 + $0xc0] sm:$0xf]  ;;  %v2070_v32 = vor.u32 %v2724_v19, %v2069_v18 }
  0x2c   :  { %1275 = vmatpush.bf16.msra.mxu1 %v2010_v55  ;;  %1300 = vmatpush.bf16.msra.mxu3 %v2214_v62  ;;  %v2841_v23 = vld [vmem:[#allocation5 + $0x530] sm:$0xf0]  ;;  %v2700_v25 = vld [vmem:[#allocation5 + $0xc8] sm:$0xf0]  ;;  %v2441_v26 = vld [vmem:[#allocation5 + $0x468] sm:$0xf]  ;;  %v2346_v33 = vor.u32 %v2793_v21, %v2345_v20 }
  0x2d   :  { %v2817_v29 = vld [vmem:[#allocation5 + $0x470] sm:$0xf0]  ;;  %v2177_v30 = vld [vmem:[#allocation5 + $0x258] sm:$0xf]  ;;  %v2751_v31 = vld [vmem:[#allocation5 + $0x260] sm:$0xf0]  ;;  %v2538_v35 = vor.u32 %v2841_v23, %v2537_v22  ;;  %v1974_v36 = vor.u32 %v2700_v25, %v1973_v24 }
  0x2e   :  { %1263 = vmatpush.bf16.msra.mxu0 %v1902_v63  ;;  %v2333_v34 = vld [vmem:[#allocation5 + $0x390] sm:$0xf]  ;;  %v2790_v37 = vld [vmem:[#allocation5 + $0x398] sm:$0xf0]  ;;  %v2442_v40 = vor.u32 %v2817_v29, %v2441_v26  ;;  %v2178_v43 = vor.u32 %v2751_v31, %v2177_v30  ;;  %v2165_v45 = vld [vmem:[#allocation5 + $0x240] sm:$0xf] }
  0x2f   :  { %1289 = vmatpush.bf16.msra.mxu2 %v2094_v2  ;;  %v2525_v38 = vld [vmem:[#allocation5 + $0x510] sm:$0xf]  ;;  %v2838_v39 = vld [vmem:[#allocation5 + $0x518] sm:$0xf0]  ;;  %v2748_v46 = vld [vmem:[#allocation5 + $0x248] sm:$0xf0]  ;;  %v2334_v49 = vor.u32 %v2790_v37, %v2333_v34 }
  0x30   :  { %1276 = vmatpush.bf16.msra.mxu1 %v1998_v3  ;;  %1301 = vmatpush.bf16.msra.mxu3 %v2202_v11  ;;  %v2429_v41 = vld [vmem:[#allocation5 + $0x450] sm:$0xf]  ;;  %v2814_v42 = vld [vmem:[#allocation5 + $0x458] sm:$0xf0]  ;;  %v101_v48 = vld [vmem:[#allocation2] sm:$0xff]  ;;  %v2526_v54 = vor.u32 %v2838_v39, %v2525_v38  ;;  %v2166_v62 = vor.u32 %v2748_v46, %v2165_v45  ;;  %s3048_s29 = smov [#allocation11]  }
  0x31   :  { %v102_v44 = vld [vmem:[#allocation2 + $0x8] sm:$0xff]  ;;  %v1963_v51 = vld [vmem:[#allocation5 + $0xb4] sm:$0xf0]  ;;  %v341_v52 = vunpack.c.l.b16 %v101_v48  ;;  %v342_v53 = vunpack.c.h.b16 %v101_v48  ;;  %v2430_v55 = vor.u32 %v2814_v42, %v2429_v41  ;;  %v2787_v57 = vld [vmem:[#allocation5 + $0x380] sm:$0xf0]  ;;  %s1861_s30 = sshll.u32 %s3048_s29, 4  ;;  %s1862_s30 = int_to_ptr.vmem [resolvable:$true] %s1861_s30 }
  0x32   :  { %1264 = vmatpush.bf16.msra.mxu0 %v1890_v12  ;;  %v343_v47 = vunpack.c.l.b16 %v102_v44  ;;  %v2696_v50 = vld [vmem:[#allocation5 + $0xac] sm:$0xf]  ;;  %v2321_v56 = vld [vmem:[#allocation5 + $0x378] sm:$0xf]  ;;  %v344_v59 = vunpack.c.h.b16 %v102_v44  ;;  %v2835_v61 = vld [vmem:[#allocation5 + $0x500] sm:$0xf0] }
  0x33   :  { %1290 = vmatpush.bf16.msra.mxu2 %v2082_v16  ;;  %v2513_v60 = vld [vmem:[#allocation5 + $0x4f8] sm:$0xf]  ;;  %v3106_v63 = vpack.c.b16 %v341_v52, %v341_v52  ;;  %v3108_v0 = vpack.c.b16 %v342_v53, %v342_v53  ;;  %v2811_v2 = vld [vmem:[#allocation5 + $0x440] sm:$0xf0]  ;;  %v1966_v3 = vor.u32 %v2696_v50, %v1963_v51  ;;  %v2322_v4 = vor.u32 %v2787_v57, %v2321_v56  ;;  %v2693_v5 = vld [vmem:[#allocation5 + $0x94] sm:$0xf] }
  0x34   :  { %1277 = vmatpush.bf16.msra.mxu1 %v1986_v17  ;;  %1302 = vmatpush.bf16.msra.mxu3 %v2190_v27  ;;  %v3104_v58 = vpack.c.b16 %v343_v47, %v343_v47  ;;  %v2417_v1 = vld [vmem:[#allocation5 + $0x438] sm:$0xf]  ;;  %v1951_v6 = vld [vmem:[#allocation5 + $0x9c] sm:$0xf0]  ;;  %v2514_v7 = vor.u32 %v2835_v61, %v2513_v60  ;;  %v2784_v9 = vld [vmem:[#allocation5 + $0x368] sm:$0xf0]  ;;  %v3113_v10 = vpack.c.b16 %v344_v59, %v344_v59 }
  0x35   :  { %v2309_v8 = vld [vmem:[#allocation5 + $0x360] sm:$0xf]  ;;  %v2418_v11 = vor.u32 %v2811_v2, %v2417_v1  ;;  %v2832_v13 = vld [vmem:[#allocation5 + $0x4e8] sm:$0xf0]  ;;  %v1954_v16 = vor.u32 %v2693_v5, %v1951_v6  ;;  %v2690_v18 = vld [vmem:[#allocation5 + $0x7c] sm:$0xf] }
  0x36   :  { %1265 = vmatpush.bf16.msra.mxu0 %v1878_v28  ;;  %v2501_v12 = vld [vmem:[#allocation5 + $0x4e0] sm:$0xf]  ;;  %v2808_v15 = vld [vmem:[#allocation5 + $0x428] sm:$0xf0]  ;;  %v2310_v17 = vor.u32 %v2784_v9, %v2309_v8  ;;  %v1939_v19 = vld [vmem:[#allocation5 + $0x84] sm:$0xf0] }
  0x37   :  { %1291 = vmatpush.bf16.msra.mxu2 %v2070_v32  ;;  %v2405_v14 = vld [vmem:[#allocation5 + $0x420] sm:$0xf]  ;;  %v2502_v20 = vor.u32 %v2832_v13, %v2501_v12  ;;  %v2297_v21 = vld [vmem:[#allocation5 + $0x348] sm:$0xf]  ;;  %v2781_v22 = vld [vmem:[#allocation5 + $0x350] sm:$0xf0]  ;;  %v1942_v28 = vor.u32 %v2690_v18, %v1939_v19 }
  0x38   :  { %1278 = vmatpush.bf16.msra.mxu1 %v1974_v36  ;;  %1303 = vmatpush.bf16.msra.mxu3 %v2178_v43  ;;  %v2406_v23 = vor.u32 %v2808_v15, %v2405_v14  ;;  %v2489_v24 = vld [vmem:[#allocation5 + $0x4c8] sm:$0xf]  ;;  %v2829_v25 = vld [vmem:[#allocation5 + $0x4d0] sm:$0xf0]  ;;  %v2298_v29 = vor.u32 %v2781_v22, %v2297_v21  ;;  %v2687_v30 = vld [vmem:[#allocation5 + $0x64] sm:$0xf] }
  0x39   :  { %1266 = vmatmul.bf16.vlgmr.msra.gmra.mxu0 %v3106_v63  ;;  %v2393_v26 = vld [vmem:[#allocation5 + $0x408] sm:$0xf]  ;;  %v2805_v27 = vld [vmem:[#allocation5 + $0x410] sm:$0xf0]  ;;  %v1927_v31 = vld [vmem:[#allocation5 + $0x6c] sm:$0xf0]  ;;  %v2490_v32 = vor.u32 %v2829_v25, %v2489_v24 }
  0x3a   :  { %1310 = vmatpush.bf16.msrb.mxu0 %v2346_v33  ;;  %1292 = vmatmul.bf16.vlgmr.msra.gmra.mxu2 %v3104_v58  ;;  %v2285_v33 = vld [vmem:[#allocation5 + $0x330] sm:$0xf]  ;;  %v2778_v34 = vld [vmem:[#allocation5 + $0x338] sm:$0xf0]  ;;  %v2684_v42 = vld [vmem:[#allocation5 + $0x4c] sm:$0xf] }
  0x3b   :  { %1336 = vmatpush.bf16.msrb.mxu2 %v2538_v35  ;;  %1279 = vmatmul.bf16.vlgmr.msra.gmra.mxu1 %v3108_v0  ;;  %v2394_v35 = vor.u32 %v2805_v27, %v2393_v26  ;;  %v2477_v36 = vld [vmem:[#allocation5 + $0x4b0] sm:$0xf]  ;;  %v2826_v37 = vld [vmem:[#allocation5 + $0x4b8] sm:$0xf0]  ;;  %v2286_v41 = vor.u32 %v2778_v34, %v2285_v33  ;;  %v1915_v43 = vld [vmem:[#allocation5 + $0x54] sm:$0xf0] }
  0x3c   :  { %1323 = vmatpush.bf16.msrb.mxu1 %v2442_v40  ;;  %1304 = vmatpush.bf16.msra.mxu3 %v2166_v62  ;;  %v2381_v38 = vld [vmem:[#allocation5 + $0x3f0] sm:$0xf]  ;;  %v2802_v39 = vld [vmem:[#allocation5 + $0x3f8] sm:$0xf0]  ;;  %v1930_v40 = vor.u32 %v2687_v30, %v1927_v31  ;;  %v2478_v44 = vor.u32 %v2826_v37, %v2477_v36  ;;  %v2273_v45 = vld [vmem:[#allocation5 + $0x318] sm:$0xf] }
  0x3d   :  { %v2775_v46 = vld [vmem:[#allocation5 + $0x320] sm:$0xf0]  ;;  %v2382_v47 = vor.u32 %v2802_v39, %v2381_v38  ;;  %v2465_v48 = vld [vmem:[#allocation5 + $0x498] sm:$0xf]  ;;  %v2261_v52 = vld [vmem:[#allocation5 + $0x300] sm:$0xf] }
  0x3e   :  { %1311 = vmatpush.bf16.msrb.mxu0 %v2334_v49  ;;  %v2823_v49 = vld [vmem:[#allocation5 + $0x4a0] sm:$0xf0]  ;;  %v2369_v50 = vld [vmem:[#allocation5 + $0x3d8] sm:$0xf]  ;;  %v2772_v53 = vld [vmem:[#allocation5 + $0x308] sm:$0xf0] }
  0x3f   :  { %1337 = vmatpush.bf16.msrb.mxu2 %v2526_v54  ;;  %1305 = vmatmul.bf16.vlgmr.msra.gmra.mxu3 %v3113_v10  ;;  %v2799_v51 = vld [vmem:[#allocation5 + $0x3e0] sm:$0xf0]  ;;  %v1918_v54 = vor.u32 %v2684_v42, %v1915_v43  ;;  %v103_v56 = vld [vmem:[#allocation2 + $0x10] sm:$0xff]  ;;  %v1903_v59 = vld [vmem:[#allocation5 + $0x3c] sm:$0xf0]  ;;  %v2466_v60 = vor.u32 %v2823_v49, %v2465_v48  ;;  %v2262_v12 = vor.u32 %v2772_v53, %v2261_v52  ;;  %s1863_s10 = sshll.u32 %s3160_s7, 4  ;;  %s1864_s10 = int_to_ptr.hbm [resolvable:$true] %s1863_s10 }
  0x40   :  { %1324 = vmatpush.bf16.msrb.mxu1 %v2430_v55  ;;  %1349 = vmatpush.bf16.msrb.mxu3 %v1966_v3  ;;  %v2274_v55 = vor.u32 %v2775_v46, %v2273_v45  ;;  %v2681_v57 = vld [vmem:[#allocation5 + $0x34] sm:$0xf]  ;;  %v2453_v61 = vld [vmem:[#allocation5 + $0x480] sm:$0xf]  ;;  %v2820_v62 = vld [vmem:[#allocation5 + $0x488] sm:$0xf0]  ;;  %v2370_v2 = vor.u32 %v2799_v51, %v2369_v50  ;;  %v346_v18 = vunpack.c.h.b16 %v103_v56 }
  0x41   :  { %v104_v1 = vld [vmem:[#allocation2 + $0x18] sm:$0xf]  ;;  %v2720_v3 = vld [vmem:[#allocation5 + $0x16c] sm:$0xf]  ;;  %v2357_v5 = vld [vmem:[#allocation5 + $0x3c0] sm:$0xf]  ;;  %v1906_v8 = vor.u32 %v2681_v57, %v1903_v59 }
  0x42   :  { %1312 = vmatpush.bf16.msrb.mxu0 %v2322_v4  ;;  %v2059_v4 = vld [vmem:[#allocation5 + $0x174] sm:$0xf0]  ;;  %v2796_v6 = vld [vmem:[#allocation5 + $0x3c8] sm:$0xf0]  ;;  %v347_v13 = vunpack.c.l.b16 %v104_v1  ;;  %v2678_v19 = vld [vmem:[#allocation5 + $0x1c] sm:$0xf]  ;;  %v3120_v34 = vpack.c.b16 %v346_v18, %v346_v18 }
  0x43   :  { %1338 = vmatpush.bf16.msrb.mxu2 %v2514_v7  ;;  %v345_v7 = vunpack.c.l.b16 %v103_v56  ;;  %v2768_v9 = vld [vmem:[#allocation5 + $0x2ec] sm:$0xf]  ;;  %v2155_v15 = vld [vmem:[#allocation5 + $0x234] sm:$0xf0]  ;;  %v2358_v21 = vor.u32 %v2796_v6, %v2357_v5  ;;  %v2717_v22 = vld [vmem:[#allocation5 + $0x154] sm:$0xf] }
  0x44   :  { %1325 = vmatpush.bf16.msrb.mxu1 %v2418_v11  ;;  %1350 = vmatpush.bf16.msrb.mxu3 %v1954_v16  ;;  %v2251_v11 = vld [vmem:[#allocation5 + $0x2f4] sm:$0xf0]  ;;  %v2744_v14 = vld [vmem:[#allocation5 + $0x22c] sm:$0xf]  ;;  %v2454_v16 = vor.u32 %v2820_v62, %v2453_v61  ;;  %v2765_v27 = vld [vmem:[#allocation5 + $0x2d4] sm:$0xf] }
  0x45   :  { %v2254_v24 = vor.u32 %v2768_v9, %v2251_v11  ;;  %v2158_v25 = vor.u32 %v2744_v14, %v2155_v15  ;;  %v3116_v26 = vpack.c.b16 %v345_v7, %v345_v7  ;;  %v2741_v30 = vld [vmem:[#allocation5 + $0x214] sm:$0xf]  ;;  %v2143_v31 = vld [vmem:[#allocation5 + $0x21c] sm:$0xf0]  ;;  %v2675_v36 = vld [vmem:[#allocation5 + $0x4] sm:$0xf] }
  0x46   :  { %1313 = vmatpush.bf16.msrb.mxu0 %v2310_v17  ;;  %v2062_v17 = vor.u32 %v2720_v3, %v2059_v4  ;;  %v1879_v37 = vld [vmem:[#allocation5 + $0xc] sm:$0xf0]  ;;  %v2035_v38 = vld [vmem:[#allocation5 + $0x144] sm:$0xf0]  ;;  %v2792_v39 = vld [vmem:[#allocation5 + $0x3ac] sm:$0xf]  ;;  %v2146_v42 = vor.u32 %v2741_v30, %v2143_v31 }
  0x47   :  { %1339 = vmatpush.bf16.msrb.mxu2 %v2502_v20  ;;  %v1891_v20 = vld [vmem:[#allocation5 + $0x24] sm:$0xf0]  ;;  %v2762_v43 = vld [vmem:[#allocation5 + $0x2bc] sm:$0xf]  ;;  %v2711_v49 = vld [vmem:[#allocation5 + $0x124] sm:$0xf] }
  0x48   :  { %1326 = vmatpush.bf16.msrb.mxu1 %v2406_v23  ;;  %1351 = vmatpush.bf16.msrb.mxu3 %v1942_v28  ;;  %v2047_v23 = vld [vmem:[#allocation5 + $0x15c] sm:$0xf0]  ;;  %v2738_v45 = vld [vmem:[#allocation5 + $0x1fc] sm:$0xf]  ;;  %v2131_v46 = vld [vmem:[#allocation5 + $0x204] sm:$0xf0] }
  0x49   :  { %v2239_v28 = vld [vmem:[#allocation5 + $0x2dc] sm:$0xf0]  ;;  %v2050_v33 = vor.u32 %v2717_v22, %v2047_v23  ;;  %v2023_v51 = vld [vmem:[#allocation5 + $0x12c] sm:$0xf0]  ;;  %v2789_v52 = vld [vmem:[#allocation5 + $0x394] sm:$0xf] }
  0x4a   :  { %1314 = vmatpush.bf16.msrb.mxu0 %v2298_v29  ;;  %v3118_v29 = vpack.c.b16 %v347_v13, %v347_v13  ;;  %v2335_v53 = vld [vmem:[#allocation5 + $0x39c] sm:$0xf0]  ;;  %v2759_v56 = vld [vmem:[#allocation5 + $0x2a4] sm:$0xf]  ;;  %v2215_v57 = vld [vmem:[#allocation5 + $0x2ac] sm:$0xf0]  ;;  %v2026_v61 = vor.u32 %v2711_v49, %v2023_v51 }
  0x4b   :  { %1340 = vmatpush.bf16.msrb.mxu2 %v2490_v32  ;;  %v1894_v32 = vor.u32 %v2678_v19, %v1891_v20  ;;  %v2735_v59 = vld [vmem:[#allocation5 + $0x1e4] sm:$0xf]  ;;  %v2708_v62 = vld [vmem:[#allocation5 + $0x10c] sm:$0xf]  ;;  %v2338_v1 = vor.u32 %v2789_v52, %v2335_v53  ;;  %v2786_v3 = vld [vmem:[#allocation5 + $0x37c] sm:$0xf]  ;;  %v2218_v5 = vor.u32 %v2759_v56, %v2215_v57 }
  0x4c   :  { %1327 = vmatpush.bf16.msrb.mxu1 %v2394_v35  ;;  %1352 = vmatpush.bf16.msrb.mxu3 %v1930_v40  ;;  %v2714_v35 = vld [vmem:[#allocation5 + $0x13c] sm:$0xf]  ;;  %v2347_v40 = vld [vmem:[#allocation5 + $0x3b4] sm:$0xf0]  ;;  %v2323_v4 = vld [vmem:[#allocation5 + $0x384] sm:$0xf0] }
  0x4d   :  { %v2038_v48 = vor.u32 %v2714_v35, %v2035_v38  ;;  %v2350_v50 = vor.u32 %v2792_v39, %v2347_v40  ;;  %v2756_v7 = vld [vmem:[#allocation5 + $0x28c] sm:$0xf]  ;;  %v2107_v11 = vld [vmem:[#allocation5 + $0x1d4] sm:$0xf0]  ;;  %v2705_v13 = vld [vmem:[#allocation5 + $0xf4] sm:$0xf]  ;;  %v2326_v15 = vor.u32 %v2786_v3, %v2323_v4 }
  0x4e   :  { %1315 = vmatpush.bf16.msrb.mxu0 %v2286_v41  ;;  %v2242_v41 = vor.u32 %v2765_v27, %v2239_v28  ;;  %v2732_v9 = vld [vmem:[#allocation5 + $0x1cc] sm:$0xf]  ;;  %v1999_v14 = vld [vmem:[#allocation5 + $0xfc] sm:$0xf0]  ;;  %v2753_v20 = vld [vmem:[#allocation5 + $0x274] sm:$0xf] }
  0x4f   :  { %1341 = vmatpush.bf16.msrb.mxu2 %v2478_v44  ;;  %v2227_v44 = vld [vmem:[#allocation5 + $0x2c4] sm:$0xf0]  ;;  %v2110_v19 = vor.u32 %v2732_v9, %v2107_v11  ;;  %v2729_v22 = vld [vmem:[#allocation5 + $0x1b4] sm:$0xf]  ;;  %v2095_v23 = vld [vmem:[#allocation5 + $0x1bc] sm:$0xf0] }
  0x50   :  { %1328 = vmatpush.bf16.msrb.mxu1 %v2382_v47  ;;  %1353 = vmatpush.bf16.msrb.mxu3 %v1918_v54  ;;  %v1882_v47 = vor.u32 %v2675_v36, %v1879_v37  ;;  %v2230_v54 = vor.u32 %v2762_v43, %v2227_v44  ;;  %v1987_v28 = vld [vmem:[#allocation5 + $0xe4] sm:$0xf0]  ;;  %v2780_v30 = vld [vmem:[#allocation5 + $0x34c] sm:$0xf]  ;;  %v2299_v31 = vld [vmem:[#allocation5 + $0x354] sm:$0xf0] }
  0x51   :  { %v2750_v35 = vld [vmem:[#allocation5 + $0x25c] sm:$0xf]  ;;  %v2179_v36 = vld [vmem:[#allocation5 + $0x264] sm:$0xf0]  ;;  %v2699_v40 = vld [vmem:[#allocation5 + $0xc4] sm:$0xf] }
  0x52   :  { %1316 = vmatpush.bf16.msrb.mxu0 %v2274_v55  ;;  %v2134_v55 = vor.u32 %v2738_v45, %v2131_v46  ;;  %v2726_v37 = vld [vmem:[#allocation5 + $0x19c] sm:$0xf]  ;;  %v2083_v38 = vld [vmem:[#allocation5 + $0x1a4] sm:$0xf0]  ;;  %v2816_v43 = vld [vmem:[#allocation5 + $0x46c] sm:$0xf] }
  0x53   :  { %1342 = vmatpush.bf16.msrb.mxu2 %v2466_v60  ;;  %v2119_v60 = vld [vmem:[#allocation5 + $0x1ec] sm:$0xf0]  ;;  %v2443_v44 = vld [vmem:[#allocation5 + $0x474] sm:$0xf0]  ;;  %v2777_v45 = vld [vmem:[#allocation5 + $0x334] sm:$0xf] }
  0x54   :  { %1329 = vmatpush.bf16.msrb.mxu1 %v2370_v2  ;;  %1354 = vmatpush.bf16.msrb.mxu3 %v1906_v8  ;;  %v2011_v2 = vld [vmem:[#allocation5 + $0x114] sm:$0xf0]  ;;  %v2122_v6 = vor.u32 %v2735_v59, %v2119_v60  ;;  %v2287_v46 = vld [vmem:[#allocation5 + $0x33c] sm:$0xf0]  ;;  %v2723_v49 = vld [vmem:[#allocation5 + $0x184] sm:$0xf]  ;;  %v2446_v60 = vor.u32 %v2816_v43, %v2443_v44 }
  0x55   :  { %v2203_v8 = vld [vmem:[#allocation5 + $0x294] sm:$0xf0]  ;;  %v2167_v51 = vld [vmem:[#allocation5 + $0x24c] sm:$0xf0]  ;;  %v2840_v56 = vld [vmem:[#allocation5 + $0x52c] sm:$0xf]  ;;  %v2290_v59 = vor.u32 %v2777_v45, %v2287_v46 }
  0x56   :  { %1317 = vmatpush.bf16.msrb.mxu0 %v2262_v12  ;;  %v2014_v12 = vor.u32 %v2708_v62, %v2011_v2  ;;  %v2206_v18 = vor.u32 %v2756_v7, %v2203_v8  ;;  %v2071_v52 = vld [vmem:[#allocation5 + $0x18c] sm:$0xf0]  ;;  %v2539_v57 = vld [vmem:[#allocation5 + $0x534] sm:$0xf0]  ;;  %v2275_v62 = vld [vmem:[#allocation5 + $0x324] sm:$0xf0] }
  0x57   :  { %1343 = vmatpush.bf16.msrb.mxu2 %v2454_v16  ;;  %v2783_v16 = vld [vmem:[#allocation5 + $0x364] sm:$0xf]  ;;  %v1969_v53 = vld [vmem:[#allocation5 + $0xb0] sm:$0xf]  ;;  %v2074_v2 = vor.u32 %v2723_v49, %v2071_v52  ;;  %v2813_v3 = vld [vmem:[#allocation5 + $0x454] sm:$0xf] }
  0x58   :  { %1330 = vmatpush.bf16.msrb.mxu1 %v2358_v21  ;;  %1355 = vmatpush.bf16.msrb.mxu3 %v1894_v32  ;;  %v2191_v21 = vld [vmem:[#allocation5 + $0x27c] sm:$0xf0]  ;;  %v1957_v7 = vld [vmem:[#allocation5 + $0x98] sm:$0xf]  ;;  %v2695_v8 = vld [vmem:[#allocation5 + $0xa0] sm:$0xf0] }
  0x59   :  { %1318 = vmatmul.bf16.vlgmr.msrb.gmra.mxu0 %v3116_v26  ;;  %v2194_v32 = vor.u32 %v2753_v20, %v2191_v21  ;;  %v2431_v4 = vld [vmem:[#allocation5 + $0x45c] sm:$0xf0]  ;;  %v2837_v9 = vld [vmem:[#allocation5 + $0x514] sm:$0xf]  ;;  %v1958_v20 = vor.u32 %v2695_v8, %v1957_v7  ;;  %v2804_v43 = vld [vmem:[#allocation5 + $0x40c] sm:$0xf] }
  0x5a   :  { %1362 = vmatpush.bf16.msra.mxu0 %v2062_v17  ;;  %1344 = vmatmul.bf16.vlgmr.msrb.gmra.mxu2 %v3118_v29  ;;  %v2311_v17 = vld [vmem:[#allocation5 + $0x36c] sm:$0xf0]  ;;  %v2527_v11 = vld [vmem:[#allocation5 + $0x51c] sm:$0xf0]  ;;  %v2395_v45 = vld [vmem:[#allocation5 + $0x414] sm:$0xf0] }
  0x5b   :  { %1388 = vmatpush.bf16.msra.mxu2 %v2254_v24  ;;  %1331 = vmatmul.bf16.vlgmr.msrb.gmra.mxu1 %v3120_v34  ;;  %v2002_v24 = vor.u32 %v2705_v13, %v1999_v14  ;;  %v2314_v27 = vor.u32 %v2783_v16, %v2311_v17  ;;  %v2434_v13 = vor.u32 %v2813_v3, %v2431_v4  ;;  %v2810_v14 = vld [vmem:[#allocation5 + $0x43c] sm:$0xf]  ;;  %v2263_v16 = vld [vmem:[#allocation5 + $0x30c] sm:$0xf0]  ;;  %v2419_v17 = vld [vmem:[#allocation5 + $0x444] sm:$0xf0] }
  0x5c   :  { %1375 = vmatpush.bf16.msra.mxu1 %v2158_v25  ;;  %1356 = vmatpush.bf16.msrb.mxu3 %v1882_v47  ;;  %v2702_v25 = vld [vmem:[#allocation5 + $0xdc] sm:$0xf]  ;;  %v2182_v47 = vor.u32 %v2750_v35, %v2179_v36  ;;  %v2530_v21 = vor.u32 %v2837_v9, %v2527_v11  ;;  %v2719_v35 = vld [vmem:[#allocation5 + $0x160] sm:$0xf0]  ;;  %v2041_v46 = vld [vmem:[#allocation5 + $0x140] sm:$0xf] }
  0x5d   :  { %v1990_v39 = vor.u32 %v2702_v25, %v1987_v28  ;;  %v2515_v25 = vld [vmem:[#allocation5 + $0x504] sm:$0xf0]  ;;  %v2422_v28 = vor.u32 %v2810_v14, %v2419_v17  ;;  %v2828_v52 = vld [vmem:[#allocation5 + $0x4cc] sm:$0xf]  ;;  %v2825_v3 = vld [vmem:[#allocation5 + $0x4b4] sm:$0xf] }
  0x5e   :  { %1363 = vmatpush.bf16.msra.mxu0 %v2050_v33  ;;  %v2098_v33 = vor.u32 %v2729_v22, %v2095_v23  ;;  %v1945_v22 = vld [vmem:[#allocation5 + $0x80] sm:$0xf]  ;;  %v2692_v23 = vld [vmem:[#allocation5 + $0x88] sm:$0xf0]  ;;  %v2371_v8 = vld [vmem:[#allocation5 + $0x3e4] sm:$0xf0] }
  0x5f   :  { %1389 = vmatpush.bf16.msra.mxu2 %v2242_v41  ;;  %1357 = vmatmul.bf16.vlgmr.msrb.gmra.mxu3 %v3106_v63  ;;  %v1975_v41 = vld [vmem:[#allocation5 + $0xcc] sm:$0xf0]  ;;  %v1946_v36 = vor.u32 %v2692_v23, %v1945_v22  ;;  %v2479_v4 = vld [vmem:[#allocation5 + $0x4bc] sm:$0xf0]  ;;  %v2710_v11 = vld [vmem:[#allocation5 + $0x118] sm:$0xf0] }
  0x60   :  { %1376 = vmatpush.bf16.msra.mxu1 %v2146_v42  ;;  %1401 = vmatpush.bf16.msra.mxu3 %v2350_v50  ;;  %v2302_v42 = vor.u32 %v2780_v30, %v2299_v31  ;;  %v2747_v50 = vld [vmem:[#allocation5 + $0x244] sm:$0xf]  ;;  %v2017_v9 = vld [vmem:[#allocation5 + $0x110] sm:$0xf]  ;;  %v1897_v14 = vld [vmem:[#allocation5 + $0x20] sm:$0xf] }
  0x61   :  { %v2807_v30 = vld [vmem:[#allocation5 + $0x424] sm:$0xf]  ;;  %v2467_v17 = vld [vmem:[#allocation5 + $0x4a4] sm:$0xf0]  ;;  %v2161_v22 = vld [vmem:[#allocation5 + $0x230] sm:$0xf] }
  0x62   :  { %1364 = vmatpush.bf16.msra.mxu0 %v2038_v48  ;;  %v2086_v48 = vor.u32 %v2726_v37, %v2083_v38  ;;  %v1933_v38 = vld [vmem:[#allocation5 + $0x68] sm:$0xf]  ;;  %v2746_v23 = vld [vmem:[#allocation5 + $0x238] sm:$0xf0] }
  0x63   :  { %1390 = vmatpush.bf16.msra.mxu2 %v2230_v54  ;;  %v2698_v54 = vld [vmem:[#allocation5 + $0xb8] sm:$0xf0] }
  0x64   :  { %1377 = vmatpush.bf16.msra.mxu1 %v2134_v55  ;;  %1402 = vmatpush.bf16.msra.mxu3 %v2338_v1  ;;  %v1978_v55 = vor.u32 %v2699_v40, %v1975_v41  ;;  %v2170_v1 = vor.u32 %v2747_v50, %v2167_v51  ;;  %v2831_v40 = vld [vmem:[#allocation5 + $0x4e4] sm:$0xf]  ;;  %v2503_v41 = vld [vmem:[#allocation5 + $0x4ec] sm:$0xf0]  ;;  %v2686_v51 = vld [vmem:[#allocation5 + $0x58] sm:$0xf0] }
  0x65   :  { %v2506_v49 = vor.u32 %v2831_v40, %v2503_v41  ;;  %v1921_v50 = vld [vmem:[#allocation5 + $0x50] sm:$0xf]  ;;  %v2770_v40 = vld [vmem:[#allocation5 + $0x2f8] sm:$0xf0]  ;;  %v2162_v41 = vor.u32 %v2746_v23, %v2161_v22 }
  0x66   :  { %1365 = vmatpush.bf16.msra.mxu0 %v2026_v61  ;;  %v2774_v61 = vld [vmem:[#allocation5 + $0x31c] sm:$0xf] }
  0x67   :  { %1391 = vmatpush.bf16.msra.mxu2 %v2218_v5  ;;  %v1970_v5 = vor.u32 %v2698_v54, %v1969_v53  ;;  %v2491_v53 = vld [vmem:[#allocation5 + $0x4d4] sm:$0xf0]  ;;  %v2398_v54 = vor.u32 %v2804_v43, %v2395_v45  ;;  %v2704_v43 = vld [vmem:[#allocation5 + $0xe8] sm:$0xf0]  ;;  %v2734_v23 = vld [vmem:[#allocation5 + $0x1d8] sm:$0xf0] }
  0x68   :  { %1378 = vmatpush.bf16.msra.mxu1 %v2122_v6  ;;  %1403 = vmatpush.bf16.msra.mxu3 %v2326_v15  ;;  %v2542_v6 = vor.u32 %v2840_v56, %v2539_v57  ;;  %v2771_v15 = vld [vmem:[#allocation5 + $0x304] sm:$0xf]  ;;  %v2383_v57 = vld [vmem:[#allocation5 + $0x3fc] sm:$0xf0] }
  0x6a   :  { %1366 = vmatpush.bf16.msra.mxu0 %v2014_v12  ;;  %v2278_v12 = vor.u32 %v2774_v61, %v2275_v62  ;;  %v1922_v61 = vor.u32 %v2686_v51, %v1921_v50  ;;  %v2494_v62 = vor.u32 %v2828_v52, %v2491_v53  ;;  %v2341_v50 = vld [vmem:[#allocation5 + $0x398] sm:$0xf]  ;;  %v2791_v51 = vld [vmem:[#allocation5 + $0x3a0] sm:$0xf0] }
  0x6b   :  { %1392 = vmatpush.bf16.msra.mxu2 %v2206_v18  ;;  %v2065_v18 = vld [vmem:[#allocation5 + $0x170] sm:$0xf]  ;;  %v2245_v53 = vld [vmem:[#allocation5 + $0x2d8] sm:$0xf] }
  0x6c   :  { %1379 = vmatpush.bf16.msra.mxu1 %v2110_v19  ;;  %1404 = vmatpush.bf16.msra.mxu3 %v2314_v27  ;;  %v2722_v19 = vld [vmem:[#allocation5 + $0x178] sm:$0xf0]  ;;  %v2266_v27 = vor.u32 %v2771_v15, %v2263_v16  ;;  %v2680_v15 = vld [vmem:[#allocation5 + $0x28] sm:$0xf0] }
  0x6d   :  { %v2066_v31 = vor.u32 %v2722_v19, %v2065_v18  ;;  %v2822_v16 = vld [vmem:[#allocation5 + $0x49c] sm:$0xf]  ;;  %v2795_v19 = vld [vmem:[#allocation5 + $0x3c4] sm:$0xf] }
  0x6e   :  { %1367 = vmatpush.bf16.msra.mxu0 %v2002_v24  ;;  %v2834_v24 = vld [vmem:[#allocation5 + $0x4fc] sm:$0xf] }
  0x6f   :  { %1393 = vmatpush.bf16.msra.mxu2 %v2194_v32  ;;  %v2407_v32 = vld [vmem:[#allocation5 + $0x42c] sm:$0xf0]  ;;  %v2518_v37 = vor.u32 %v2834_v24, %v2515_v25  ;;  %v2005_v24 = vld [vmem:[#allocation5 + $0xf8] sm:$0xf]  ;;  %v2707_v25 = vld [vmem:[#allocation5 + $0x100] sm:$0xf0] }
  0x70   :  { %1380 = vmatpush.bf16.msra.mxu1 %v2098_v33  ;;  %1405 = vmatpush.bf16.msra.mxu3 %v2302_v42  ;;  %v2053_v33 = vld [vmem:[#allocation5 + $0x158] sm:$0xf]  ;;  %v2410_v42 = vor.u32 %v2807_v30, %v2407_v32  ;;  %v2819_v30 = vld [vmem:[#allocation5 + $0x484] sm:$0xf]  ;;  %v2677_v32 = vld [vmem:[#allocation5 + $0x10] sm:$0xf0] }
  0x71   :  { %v2054_v44 = vor.u32 %v2719_v35, %v2053_v33  ;;  %v2455_v33 = vld [vmem:[#allocation5 + $0x48c] sm:$0xf0] }
  0x72   :  { %1368 = vmatpush.bf16.msra.mxu0 %v1990_v39  ;;  %v2689_v39 = vld [vmem:[#allocation5 + $0x70] sm:$0xf0]  ;;  %v2353_v35 = vld [vmem:[#allocation5 + $0x3b0] sm:$0xf]  ;;  %v2458_v45 = vor.u32 %v2819_v30, %v2455_v33  ;;  %v2758_v33 = vld [vmem:[#allocation5 + $0x298] sm:$0xf0] }
  0x73   :  { %1394 = vmatpush.bf16.msra.mxu2 %v2182_v47  ;;  %v2716_v47 = vld [vmem:[#allocation5 + $0x148] sm:$0xf0]  ;;  %v2305_v30 = vld [vmem:[#allocation5 + $0x350] sm:$0xf] }
  0x74   :  { %1381 = vmatpush.bf16.msra.mxu1 %v2086_v48  ;;  %1406 = vmatpush.bf16.msra.mxu3 %v2290_v59  ;;  %v1934_v48 = vor.u32 %v2689_v39, %v1933_v38  ;;  %v2042_v56 = vor.u32 %v2716_v47, %v2041_v46  ;;  %v2029_v59 = vld [vmem:[#allocation5 + $0x128] sm:$0xf]  ;;  %v2006_v38 = vor.u32 %v2707_v25, %v2005_v24  ;;  %v2257_v39 = vld [vmem:[#allocation5 + $0x2f0] sm:$0xf]  ;;  %v2149_v46 = vld [vmem:[#allocation5 + $0x218] sm:$0xf] }
  0x75   :  { %v2743_v47 = vld [vmem:[#allocation5 + $0x220] sm:$0xf0]  ;;  %v2425_v24 = vld [vmem:[#allocation5 + $0x440] sm:$0xf]  ;;  %v2812_v25 = vld [vmem:[#allocation5 + $0x448] sm:$0xf0] }
  0x76   :  { %1369 = vmatpush.bf16.msra.mxu0 %v1978_v55  ;;  %v2801_v55 = vld [vmem:[#allocation5 + $0x3f4] sm:$0xf] }
  0x77   :  { %1395 = vmatpush.bf16.msra.mxu2 %v2170_v1  ;;  %v1909_v1 = vld [vmem:[#allocation5 + $0x38] sm:$0xf] }
  0x78   :  { %1382 = vmatpush.bf16.msra.mxu1 %v2074_v2  ;;  %1407 = vmatpush.bf16.msra.mxu3 %v2278_v12  ;;  %v2683_v2 = vld [vmem:[#allocation5 + $0x40] sm:$0xf0] }
  0x79   :  { %1370 = vmatmul.bf16.vlgmr.msra.gmra.mxu0 %v3108_v0  ;;  %v1910_v12 = vor.u32 %v2683_v2, %v1909_v1  ;;  %v2342_v1 = vor.u32 %v2791_v51, %v2341_v50  ;;  %v2401_v50 = vld [vmem:[#allocation5 + $0x410] sm:$0xf]  ;;  %v2806_v51 = vld [vmem:[#allocation5 + $0x418] sm:$0xf0] }
  0x7a   :  { %1414 = vmatpush.bf16.msrb.mxu0 %v2446_v60  ;;  %1396 = vmatmul.bf16.vlgmr.msra.gmra.mxu2 %v3113_v10  ;;  %v2713_v60 = vld [vmem:[#allocation5 + $0x130] sm:$0xf0] }
  0x7b   :  { %1440 = vmatpush.bf16.msrb.mxu2 %v1970_v5  ;;  %1383 = vmatmul.bf16.vlgmr.msra.gmra.mxu1 %v3104_v58  ;;  %v2386_v5 = vor.u32 %v2801_v55, %v2383_v57  ;;  %v2030_v7 = vor.u32 %v2713_v60, %v2029_v59  ;;  %v2150_v55 = vor.u32 %v2743_v47, %v2149_v46  ;;  %v1981_v57 = vld [vmem:[#allocation5 + $0xc8] sm:$0xf]  ;;  %v2701_v59 = vld [vmem:[#allocation5 + $0xd0] sm:$0xf0]  ;;  %v2740_v60 = vld [vmem:[#allocation5 + $0x208] sm:$0xf0] }
  0x7c   :  { %1427 = vmatpush.bf16.msrb.mxu1 %v2542_v6  ;;  %1408 = vmatpush.bf16.msra.mxu3 %v2266_v27  ;;  %v2798_v6 = vld [vmem:[#allocation5 + $0x3dc] sm:$0xf]  ;;  %v1898_v27 = vor.u32 %v2680_v15, %v1897_v14  ;;  %v2815_v14 = vld [vmem:[#allocation5 + $0x460] sm:$0xf0]  ;;  %v2089_v47 = vld [vmem:[#allocation5 + $0x1a0] sm:$0xf] }
  0x7d   :  { %v2374_v18 = vor.u32 %v2798_v6, %v2371_v8  ;;  %v2233_v6 = vld [vmem:[#allocation5 + $0x2c0] sm:$0xf]  ;;  %v2755_v46 = vld [vmem:[#allocation5 + $0x280] sm:$0xf0] }
  0x7e   :  { %1415 = vmatpush.bf16.msrb.mxu0 %v2434_v13  ;;  %v2482_v13 = vor.u32 %v2825_v3, %v2479_v4  ;;  %v2329_v3 = vld [vmem:[#allocation5 + $0x380] sm:$0xf]  ;;  %v2788_v4 = vld [vmem:[#allocation5 + $0x388] sm:$0xf0] }
  0x7f   :  { %1441 = vmatpush.bf16.msrb.mxu2 %v1958_v20  ;;  %1409 = vmatmul.bf16.vlgmr.msra.gmra.mxu3 %v3116_v26  ;;  %v2359_v20 = vld [vmem:[#allocation5 + $0x3cc] sm:$0xf0]  ;;  %v2330_v15 = vor.u32 %v2788_v4, %v2329_v3  ;;  %v2803_v3 = vld [vmem:[#allocation5 + $0x400] sm:$0xf0] }
  0x80   :  { %1428 = vmatpush.bf16.msrb.mxu1 %v2530_v21  ;;  %1453 = vmatpush.bf16.msrb.mxu3 %v2066_v31  ;;  %v2018_v21 = vor.u32 %v2710_v11, %v2017_v9  ;;  %v1885_v31 = vld [vmem:[#allocation5 + $0x8] sm:$0xf] }
  0x81   :  { %v2125_v9 = vld [vmem:[#allocation5 + $0x1e8] sm:$0xf] }
  0x82   :  { %1416 = vmatpush.bf16.msrb.mxu0 %v2422_v28  ;;  %v2470_v28 = vor.u32 %v2822_v16, %v2467_v17  ;;  %v2317_v17 = vld [vmem:[#allocation5 + $0x368] sm:$0xf] }
  0x83   :  { %1442 = vmatpush.bf16.msrb.mxu2 %v1946_v36  ;;  %v2794_v36 = vld [vmem:[#allocation5 + $0x3b8] sm:$0xf0] }
  0x84   :  { %1429 = vmatpush.bf16.msrb.mxu1 %v2518_v37  ;;  %1454 = vmatpush.bf16.msrb.mxu3 %v2054_v44  ;;  %v2362_v37 = vor.u32 %v2795_v19, %v2359_v20  ;;  %v1886_v44 = vor.u32 %v2677_v32, %v1885_v31  ;;  %v2221_v19 = vld [vmem:[#allocation5 + $0x2a8] sm:$0xf]  ;;  %v2761_v20 = vld [vmem:[#allocation5 + $0x2b0] sm:$0xf0]  ;;  %v2782_v31 = vld [vmem:[#allocation5 + $0x358] sm:$0xf0] }
  0x85   :  { %v2209_v32 = vld [vmem:[#allocation5 + $0x290] sm:$0xf] }
  0x86   :  { %1417 = vmatpush.bf16.msrb.mxu0 %v2410_v42  ;;  %v1993_v42 = vld [vmem:[#allocation5 + $0xe0] sm:$0xf] }
  0x87   :  { %1443 = vmatpush.bf16.msrb.mxu2 %v1934_v48  ;;  %v2354_v48 = vor.u32 %v2794_v36, %v2353_v35  ;;  %v1994_v52 = vor.u32 %v2704_v43, %v1993_v42  ;;  %v2101_v36 = vld [vmem:[#allocation5 + $0x1b8] sm:$0xf]  ;;  %v2210_v42 = vor.u32 %v2758_v33, %v2209_v32  ;;  %v2509_v32 = vld [vmem:[#allocation5 + $0x4e8] sm:$0xf]  ;;  %v2833_v33 = vld [vmem:[#allocation5 + $0x4f0] sm:$0xf0] }
  0x88   :  { %1430 = vmatpush.bf16.msrb.mxu1 %v2506_v49  ;;  %1455 = vmatpush.bf16.msrb.mxu3 %v2042_v56  ;;  %v2258_v49 = vor.u32 %v2770_v40, %v2257_v39  ;;  %v2137_v56 = vld [vmem:[#allocation5 + $0x200] sm:$0xf]  ;;  %v2413_v39 = vld [vmem:[#allocation5 + $0x428] sm:$0xf]  ;;  %v2809_v40 = vld [vmem:[#allocation5 + $0x430] sm:$0xf0] }
  0x89   :  { %v2138_v8 = vor.u32 %v2740_v60, %v2137_v56  ;;  %v2293_v43 = vld [vmem:[#allocation5 + $0x338] sm:$0xf]  ;;  %v2185_v56 = vld [vmem:[#allocation5 + $0x260] sm:$0xf]  ;;  %v2077_v60 = vld [vmem:[#allocation5 + $0x188] sm:$0xf] }
  0x8a   :  { %1418 = vmatpush.bf16.msrb.mxu0 %v2398_v54  ;;  %v2767_v54 = vld [vmem:[#allocation5 + $0x2e0] sm:$0xf0] }
  0x8b   :  { %1444 = vmatpush.bf16.msrb.mxu2 %v1922_v61  ;;  %v2449_v61 = vld [vmem:[#allocation5 + $0x470] sm:$0xf]  ;;  %v2246_v2 = vor.u32 %v2767_v54, %v2245_v53  ;;  %v2281_v54 = vld [vmem:[#allocation5 + $0x320] sm:$0xf] }
  0x8c   :  { %1431 = vmatpush.bf16.msrb.mxu1 %v2494_v62  ;;  %1456 = vmatpush.bf16.msrb.mxu3 %v2030_v7  ;;  %v2818_v62 = vld [vmem:[#allocation5 + $0x478] sm:$0xf0]  ;;  %v2764_v7 = vld [vmem:[#allocation5 + $0x2c8] sm:$0xf0] }
  0x8d   :  { %v2450_v11 = vor.u32 %v2818_v62, %v2449_v61  ;;  %v2234_v16 = vor.u32 %v2764_v7, %v2233_v6  ;;  %v2725_v61 = vld [vmem:[#allocation5 + $0x190] sm:$0xf0]  ;;  %v2402_v62 = vor.u32 %v2806_v51, %v2401_v50  ;;  %v2269_v7 = vld [vmem:[#allocation5 + $0x308] sm:$0xf] }
  0x8e   :  { %1419 = vmatpush.bf16.msrb.mxu0 %v2386_v5  ;;  %v1982_v5 = vor.u32 %v2701_v59, %v1981_v57  ;;  %v2752_v57 = vld [vmem:[#allocation5 + $0x268] sm:$0xf0]  ;;  %v2821_v50 = vld [vmem:[#allocation5 + $0x490] sm:$0xf0] }
  0x8f   :  { %1445 = vmatpush.bf16.msrb.mxu2 %v1910_v12  ;;  %v2737_v12 = vld [vmem:[#allocation5 + $0x1f0] sm:$0xf0]  ;;  %v2186_v6 = vor.u32 %v2752_v57, %v2185_v56 }
  0x90   :  { %1432 = vmatpush.bf16.msrb.mxu1 %v2482_v13  ;;  %1457 = vmatpush.bf16.msrb.mxu3 %v2018_v21  ;;  %v2437_v13 = vld [vmem:[#allocation5 + $0x458] sm:$0xf]  ;;  %v2113_v21 = vld [vmem:[#allocation5 + $0x1d0] sm:$0xf] }
  0x91   :  { %v2438_v22 = vor.u32 %v2815_v14, %v2437_v13  ;;  %v2114_v35 = vor.u32 %v2734_v23, %v2113_v21  ;;  %v2365_v23 = vld [vmem:[#allocation5 + $0x3c8] sm:$0xf]  ;;  %v2857_v57 = vld [vmem:[#allocation8 + $0x70] sm:$0xff] }
  0x92   :  { %1420 = vmatpush.bf16.msrb.mxu0 %v2374_v18  ;;  %v2785_v18 = vld [vmem:[#allocation5 + $0x370] sm:$0xf0] }
  0x93   :  { %1446 = vmatpush.bf16.msrb.mxu2 %v1898_v27  ;;  %v2318_v27 = vor.u32 %v2785_v18, %v2317_v17  ;;  %v2533_v18 = vld [vmem:[#allocation5 + $0x518] sm:$0xf] }
  0x94   :  { %1433 = vmatpush.bf16.msrb.mxu1 %v2470_v28  ;;  %1458 = vmatpush.bf16.msrb.mxu3 %v2006_v38  ;;  %v2222_v28 = vor.u32 %v2761_v20, %v2221_v19  ;;  %v2731_v38 = vld [vmem:[#allocation5 + $0x1c0] sm:$0xf0] }
  0x95   :  { %v2839_v19 = vld [vmem:[#allocation5 + $0x520] sm:$0xf0] }
  0x96   :  { %1421 = vmatpush.bf16.msrb.mxu0 %v2362_v37  ;;  %v2426_v37 = vor.u32 %v2812_v25, %v2425_v24  ;;  %v2797_v24 = vld [vmem:[#allocation5 + $0x3d0] sm:$0xf0]  ;;  %v2521_v25 = vld [vmem:[#allocation5 + $0x500] sm:$0xf] }
  0x97   :  { %1447 = vmatpush.bf16.msrb.mxu2 %v1886_v44  ;;  %v2779_v44 = vld [vmem:[#allocation5 + $0x340] sm:$0xf0] }
  0x98   :  { %1434 = vmatpush.bf16.msrb.mxu1 %v2458_v45  ;;  %1459 = vmatpush.bf16.msrb.mxu3 %v1994_v52  ;;  %v2197_v45 = vld [vmem:[#allocation5 + $0x278] sm:$0xf]  ;;  %v2294_v52 = vor.u32 %v2779_v44, %v2293_v43  ;;  %v2473_v44 = vld [vmem:[#allocation5 + $0x4a0] sm:$0xf] }
  0x99   :  { %1422 = vmatmul.bf16.vlgmr.msrb.gmra.mxu0 %v3120_v34  ;;  %v2198_v53 = vor.u32 %v2755_v46, %v2197_v45  ;;  %v2824_v45 = vld [vmem:[#allocation5 + $0x4a8] sm:$0xf0]  ;;  %v3138_v46 = vld [vmem:[#allocation7] sm:$0x7] }
  0x9a   :  { %1466 = vmatpush.bf16.msra.mxu0 %v2162_v41  ;;  %1448 = vmatmul.bf16.vlgmr.msrb.gmra.mxu2 %v3106_v63  ;;  %v2126_v63 = vor.u32 %v2737_v12, %v2125_v9  ;;  %v2306_v41 = vor.u32 %v2782_v31, %v2305_v30  ;;  %v2173_v9 = vld [vmem:[#allocation5 + $0x248] sm:$0xf]  ;;  %v2078_v12 = vor.u32 %v2725_v61, %v2077_v60 }
  0x9b   :  { %1492 = vmatpush.bf16.msra.mxu2 %v2354_v48  ;;  %1435 = vmatmul.bf16.vlgmr.msrb.gmra.mxu1 %v3118_v29  ;;  %v2414_v48 = vor.u32 %v2809_v40, %v2413_v39  ;;  %v2366_v30 = vor.u32 %v2797_v24, %v2365_v23  ;;  %v2827_v40 = vld [vmem:[#allocation5 + $0x4c0] sm:$0xf0]  ;;  %v332_v24 = vperm.slane %v3138_v46, 1 }
  0x9c   :  { %1479 = vmatpush.bf16.msra.mxu1 %v2258_v49  ;;  %1460 = vmatpush.bf16.msrb.mxu3 %v1982_v5  ;;  %v2728_v49 = vld [vmem:[#allocation5 + $0x1a8] sm:$0xf0]  ;;  %v2842_v5 = vld [vmem:[#allocation5 + $0x538] sm:$0xf0]  ;;  %v2843_v61 = vld [vmem:[#allocation8] sm:$0xff] }
  0x9d   :  { %v2090_v59 = vor.u32 %v2728_v49, %v2089_v47  ;;  %v2845_v47 = vld [vmem:[#allocation8 + $0x10] sm:$0xff]  ;;  %v2461_v49 = vld [vmem:[#allocation5 + $0x488] sm:$0xf] }
  0x9e   :  { %1467 = vmatpush.bf16.msra.mxu0 %v2150_v55  ;;  %v2776_v55 = vld [vmem:[#allocation5 + $0x328] sm:$0xf0]  ;;  %v2851_v23 = vld [vmem:[#allocation8 + $0x40] sm:$0xff] }
  0x9f   :  { %1493 = vmatpush.bf16.msra.mxu2 %v2342_v1  ;;  %1461 = vmatmul.bf16.vlgmr.msrb.gmra.mxu3 %v3108_v0  ;;  %v2102_v0 = vor.u32 %v2731_v38, %v2101_v36  ;;  %v2545_v1 = vld [vmem:[#allocation5 + $0x530] sm:$0xf]  ;;  %v2282_v4 = vor.u32 %v2776_v55, %v2281_v54  ;;  %v2510_v36 = vor.u32 %v2833_v33, %v2509_v32  ;;  %v2830_v38 = vld [vmem:[#allocation5 + $0x4d8] sm:$0xf0] }
  0xa0   :  { %1480 = vmatpush.bf16.msra.mxu1 %v2246_v2  ;;  %1505 = vmatpush.bf16.msra.mxu3 %v2450_v11  ;;  %v2389_v2 = vld [vmem:[#allocation5 + $0x3f8] sm:$0xf]  ;;  %v2749_v11 = vld [vmem:[#allocation5 + $0x250] sm:$0xf0]  ;;  %v2546_v14 = vor.u32 %v2842_v5, %v2545_v1  ;;  %v2858_v54 = vld [vmem:[#allocation8 + $0x78] sm:$0xff]  ;;  %v2462_v55 = vor.u32 %v2821_v50, %v2461_v49 }
  0xa1   :  { %v2390_v13 = vor.u32 %v2803_v3, %v2389_v2  ;;  %v2174_v20 = vor.u32 %v2749_v11, %v2173_v9  ;;  %v2856_v5 = vld [vmem:[#allocation8 + $0x68] sm:$0xff] }
  0xa2   :  { %1468 = vmatpush.bf16.msra.mxu0 %v2138_v8  ;;  %v2773_v8 = vld [vmem:[#allocation5 + $0x310] sm:$0xf0] }
  0xa3   :  { %1494 = vmatpush.bf16.msra.mxu2 %v2330_v15  ;;  %v2377_v15 = vld [vmem:[#allocation5 + $0x3e0] sm:$0xf]  ;;  %v2270_v17 = vor.u32 %v2773_v8, %v2269_v7  ;;  %v2855_v8 = vld [vmem:[#allocation8 + $0x60] sm:$0xff] }
  0xa4   :  { %1481 = vmatpush.bf16.msra.mxu1 %v2234_v16  ;;  %1506 = vmatpush.bf16.msra.mxu3 %v2438_v22  ;;  %v2800_v16 = vld [vmem:[#allocation5 + $0x3e8] sm:$0xf0]  ;;  %v2534_v22 = vor.u32 %v2839_v19, %v2533_v18 }
  0xa5   :  { %v2378_v21 = vor.u32 %v2800_v16, %v2377_v15 }
  0xa6   :  { %1469 = vmatpush.bf16.msra.mxu0 %v2126_v63  ;;  %v2850_v63 = vld [vmem:[#allocation8 + $0x38] sm:$0xff] }
  0xa7   :  { %1495 = vmatpush.bf16.msra.mxu2 %v2318_v27  ;;  %v2836_v27 = vld [vmem:[#allocation5 + $0x508] sm:$0xf0] }
  0xa8   :  { %1482 = vmatpush.bf16.msra.mxu1 %v2222_v28  ;;  %1507 = vmatpush.bf16.msra.mxu3 %v2426_v37  ;;  %v2849_v28 = vld [vmem:[#allocation8 + $0x30] sm:$0xff]  ;;  %v2522_v31 = vor.u32 %v2836_v27, %v2521_v25  ;;  %v2497_v37 = vld [vmem:[#allocation5 + $0x4d0] sm:$0xf] }
  0xa9   :  { %v2498_v39 = vor.u32 %v2830_v38, %v2497_v37 }
  0xaa   :  { %1470 = vmatpush.bf16.msra.mxu0 %v2114_v35  ;;  %v2848_v35 = vld [vmem:[#allocation8 + $0x28] sm:$0xff] }
  0xab   :  { %1496 = vmatpush.bf16.msra.mxu2 %v2306_v41 }
  0xac   :  { %1483 = vmatpush.bf16.msra.mxu1 %v2210_v42  ;;  %1508 = vmatpush.bf16.msra.mxu3 %v2414_v48  ;;  %v331_v48 = vperm.slane %v3138_v46, 0 }
  0xae   :  { %1471 = vmatpush.bf16.msra.mxu0 %v2102_v0 }
  0xaf   :  { %1497 = vmatpush.bf16.msra.mxu2 %v2294_v52 }
  0xb0   :  { %1484 = vmatpush.bf16.msra.mxu1 %v2198_v53  ;;  %1509 = vmatpush.bf16.msra.mxu3 %v2402_v62  ;;  %v2844_v53 = vld [vmem:[#allocation8 + $0x8] sm:$0xff] }
  0xb2   :  { %1472 = vmatpush.bf16.msra.mxu0 %v2090_v59 }
  0xb3   :  { %1498 = vmatpush.bf16.msra.mxu2 %v2282_v4 }
  0xb4   :  { %1485 = vmatpush.bf16.msra.mxu1 %v2186_v6  ;;  %1510 = vmatpush.bf16.msra.mxu3 %v2390_v13 }
  0xb6   :  { %1473 = vmatpush.bf16.msra.mxu0 %v2078_v12  ;;  %v1267_v42 = vpop.f32.mrf.mxu0  ;;  %v2854_v12 = vld [vmem:[#allocation8 + $0x58] sm:$0xff] }
  0xb7   :  { %1499 = vmatpush.bf16.msra.mxu2 %v2270_v17  ;;  %v1268_v59 = vadd.f32 %v1267_v42, %v331_v48  ;;  %v2862_v48 = vld [vmem:[#allocation8 + $0x98] sm:$0xff] }
  0xb8   :  { %1486 = vmatpush.bf16.msra.mxu1 %v2174_v20  ;;  %1511 = vmatpush.bf16.msra.mxu3 %v2378_v21  ;;  %v1280_v41 = vpop.f32.mrf.mxu1 }
  0xb9   :  { %1474 = vmatmul.bf16.vlgmr.msra.gmra.mxu0 %v3104_v58  ;;  %v2847_v58 = vld [vmem:[#allocation8 + $0x20] sm:$0xff]  ;;  %v1281_v62 = vadd.f32 %v1280_v41, %v1268_v59 }
  0xba   :  { %1518 = vmatpush.bf16.msrb.mxu0 %v2546_v14  ;;  %1500 = vmatmul.bf16.vlgmr.msra.gmra.mxu2 %v3116_v26  ;;  %v2485_v26 = vld [vmem:[#allocation5 + $0x4b8] sm:$0xf] }
  0xbb   :  { %1487 = vmatmul.bf16.vlgmr.msra.gmra.mxu1 %v3113_v10  ;;  %v2846_v10 = vld [vmem:[#allocation8 + $0x18] sm:$0xff]  ;;  %v2486_v43 = vor.u32 %v2827_v40, %v2485_v26  ;;  %1746 = vmatpush.bf16.msrb.mxu2 %v2858_v54  ;;  %v2865_v26 = vld [vmem:[#allocation8 + $0xb0] sm:$0xff] }
  0xbc   :  { %1733 = vmatpush.bf16.msrb.mxu1 %v2850_v63  ;;  %1512 = vmatpush.bf16.msra.mxu3 %v2366_v30  ;;  %v2852_v63 = vld [vmem:[#allocation8 + $0x48] sm:$0xff] }
  0xbd   :  { %v1293_v0 = vpop.f32.mrf.mxu2 }
  0xbe   :  { %1519 = vmatpush.bf16.msrb.mxu0 %v2534_v22  ;;  %v1269_v52 = vpop.f32.mrf.mxu0  ;;  %v1294_v2 = vadd.f32 %v1293_v0, %v1281_v62 }
  0xbf   :  { %1513 = vmatmul.bf16.vlgmr.msra.gmra.mxu3 %v3120_v34  ;;  %v2474_v34 = vor.u32 %v2824_v45, %v2473_v44  ;;  %1747 = vmatpush.bf16.msrb.mxu2 %v2857_v57  ;;  %v333_v57 = vperm.slane %v3138_v46, 2 }
  0xc0   :  { %1734 = vmatpush.bf16.msrb.mxu1 %v2849_v28  ;;  %v1282_v51 = vpop.f32.mrf.mxu1 }
  0xc1   :  { %v2861_v51 = vld [vmem:[#allocation8 + $0x90] sm:$0xff] }
  0xc2   :  { %1520 = vmatpush.bf16.msrb.mxu0 %v2522_v31  ;;  %v1306_v56 = vpop.f32.mrf.mxu3 }
  0xc3   :  { %v1307_v3 = vadd.f32 %v1306_v56, %v1294_v2  ;;  %1748 = vmatpush.bf16.msrb.mxu2 %v2856_v5 }
  0xc4   :  { %1735 = vmatpush.bf16.msrb.mxu1 %v2848_v35 }
  0xc5   :  { %v1295_v60 = vpop.f32.mrf.mxu2 }
  0xc6   :  { %1521 = vmatpush.bf16.msrb.mxu0 %v2510_v36 }
  0xc7   :  { %1749 = vmatpush.bf16.msrb.mxu2 %v2855_v8 }
  0xc8   :  { %1736 = vmatpush.bf16.msrb.mxu1 %v2847_v58  ;;  %v2866_v58 = vld [vmem:[#allocation8 + $0xb8] sm:$0xff] }
  0xc9   :  { %1759 = vmatpush.bf16.msrb.mxu3 %v2866_v58 }
  0xca   :  { %1522 = vmatpush.bf16.msrb.mxu0 %v2498_v39  ;;  %v1308_v1 = vpop.f32.mrf.mxu3 }
  0xcb   :  { %1750 = vmatpush.bf16.msrb.mxu2 %v2854_v12 }
  0xcc   :  { %1737 = vmatpush.bf16.msrb.mxu1 %v2846_v10 }
  0xcd   :  { %1760 = vmatpush.bf16.msrb.mxu3 %v2865_v26 }
  0xce   :  { %1523 = vmatpush.bf16.msrb.mxu0 %v2486_v43  ;;  %v2864_v43 = vld [vmem:[#allocation8 + $0xa8] sm:$0xff] }
  0xd0   :  { %1738 = vmatpush.bf16.msrb.mxu1 %v2845_v47  ;;  %v2863_v47 = vld [vmem:[#allocation8 + $0xa0] sm:$0xff] }
  0xd1   :  { %1761 = vmatpush.bf16.msrb.mxu3 %v2864_v43 }
  0xd2   :  { %1524 = vmatpush.bf16.msrb.mxu0 %v2474_v34 }
  0xd4   :  { %1739 = vmatpush.bf16.msrb.mxu1 %v2844_v53  ;;  %v2860_v53 = vld [vmem:[#allocation8 + $0x88] sm:$0xff] }
  0xd5   :  { %1762 = vmatpush.bf16.msrb.mxu3 %v2863_v47 }
  0xd6   :  { %1525 = vmatpush.bf16.msrb.mxu0 %v2462_v55  ;;  %v1319_v4 = vpop.f32.mrf.mxu0  ;;  %v2859_v55 = vld [vmem:[#allocation8 + $0x80] sm:$0xff] }
  0xd7   :  { %v1320_v6 = vadd.f32 %v1319_v4, %v1307_v3 }
  0xd8   :  { %1740 = vmatpush.bf16.msrb.mxu1 %v2843_v61  ;;  %v1332_v7 = vpop.f32.mrf.mxu1 }
  0xd9   :  { %1526 = vmatmul.bf16.vlgmr.msrb.gmra.mxu0 %v3118_v29  ;;  %v1333_v9 = vadd.f32 %v1332_v7, %v1320_v6  ;;  %v2853_v29 = vld [vmem:[#allocation8 + $0x50] sm:$0xff]  ;;  %1763 = vmatpush.bf16.msrb.mxu3 %v2862_v48 }
  0xda   :  { %1751 = vmatpush.bf16.msrb.mxu2 %v2853_v29  ;;  %v2872_v29 = vld [vmem:[#allocation10 + $0x28] sm:$0xff] }
  0xdd   :  { %v1345_v11 = vpop.f32.mrf.mxu2  ;;  %1764 = vmatpush.bf16.msrb.mxu3 %v2861_v51 }
  0xde   :  { %v1346_v13 = vadd.f32 %v1345_v11, %v1333_v9  ;;  %v1321_v14 = vpop.f32.mrf.mxu0  ;;  %1752 = vmatpush.bf16.msrb.mxu2 %v2852_v63 }
  0xe0   :  { %v1531_v15 = vmax.f32 %v1346_v13, 0.0  ;;  %v1334_v16 = vpop.f32.mrf.mxu1 }
  0xe1   :  { %1765 = vmatpush.bf16.msrb.mxu3 %v2860_v53  ;;  %v2874_v16 = vld [vmem:[#allocation10 + $0x38] sm:$0xff] }
  0xe2   :  { %v1534_v17 = vpack.c.bf16 %v1531_v15, %v1531_v15  ;;  %v1358_v18 = vpop.f32.mrf.mxu3  ;;  %1753 = vmatpush.bf16.msrb.mxu2 %v2851_v23  ;;  %1842 = vmatpush.bf16.msra.mxu0 %v2874_v16  ;;  %v2867_v23 = vld [vmem:[#allocation10] sm:$0xff] }
  0xe3   :  { %v1359_v28 = vadd.f32 %v1358_v18, %v332_v24  ;;  %v2871_v18 = vld [vmem:[#allocation10 + $0x20] sm:$0xff] }
  0xe4   :  { %1741 = vmatmul.bf16.vlgmr.msrb.gmra.mxu1 %v1534_v17  ;;  %v2873_v17 = vld [vmem:[#allocation10 + $0x30] sm:$0xff]  ;;  %v2885_v24 = vld [vmem:[%s3157_s4] ss:$0 sm:$0xff] }
  0xe5   :  { %v1347_v19 = vpop.f32.mrf.mxu2  ;;  %1766 = vmatpush.bf16.msrb.mxu3 %v2859_v55 }
  0xe6   :  { %1843 = vmatpush.bf16.msra.mxu0 %v2873_v17  ;;  %v2870_v19 = vld [vmem:[#allocation10 + $0x18] sm:$0xff] }
  0xea   :  { %v1360_v20 = vpop.f32.mrf.mxu3  ;;  %1844 = vmatpush.bf16.msra.mxu0 %v2872_v29 }
  0xeb   :  { %v2869_v20 = vld [vmem:[#allocation10 + $0x10] sm:$0xff] }
  0xee   :  { %1845 = vmatpush.bf16.msra.mxu0 %v2871_v18 }
  0xf2   :  { %1846 = vmatpush.bf16.msra.mxu0 %v2870_v19 }
  0xf6   :  { %v1371_v21 = vpop.f32.mrf.mxu0  ;;  %1847 = vmatpush.bf16.msra.mxu0 %v2869_v20 }
  0xf7   :  { %v1372_v31 = vadd.f32 %v1371_v21, %v1359_v28 }
  0xf8   :  { %v1384_v22 = vpop.f32.mrf.mxu1 }
  0xf9   :  { %v1385_v35 = vadd.f32 %v1384_v22, %v1372_v31  ;;  %v2868_v22 = vld [vmem:[#allocation10 + $0x8] sm:$0xff] }
  0xfa   :  { %1848 = vmatpush.bf16.msra.mxu0 %v2868_v22 }
  0xfd   :  { %v1397_v25 = vpop.f32.mrf.mxu2 }
  0xfe   :  { %v1373_v27 = vpop.f32.mrf.mxu0  ;;  %v1398_v36 = vadd.f32 %v1397_v25, %v1385_v35  ;;  %1849 = vmatpush.bf16.msra.mxu0 %v2867_v23  ;;  %v2886_v35 = vld [vmem:[%s3159_s6] ss:$0 sm:$0xff] }
 0x100   :  { %v1386_v30 = vpop.f32.mrf.mxu1 }
 0x102   :  { %v1410_v32 = vpop.f32.mrf.mxu3 }
 0x103   :  { %v1411_v38 = vadd.f32 %v1410_v32, %v1398_v36 }
 0x105   :  { %v1399_v33 = vpop.f32.mrf.mxu2 }
 0x10a   :  { %v1412_v37 = vpop.f32.mrf.mxu3 }
 0x116   :  { %v1423_v39 = vpop.f32.mrf.mxu0 }
 0x117   :  { %v1424_v40 = vadd.f32 %v1423_v39, %v1411_v38 }
 0x118   :  { %v1436_v41 = vpop.f32.mrf.mxu1 }
 0x119   :  { %v1437_v42 = vadd.f32 %v1436_v41, %v1424_v40 }
 0x11b   :  { %v1532_v10 = vmax.f32 %v1437_v42, 0.0 }
 0x11d   :  { %v1535_v44 = vpack.c.bf16 %v1532_v10, %v1532_v10  ;;  %v1449_v45 = vpop.f32.mrf.mxu2 }
 0x11e   :  { %v1425_v0 = vpop.f32.mrf.mxu0  ;;  %v1450_v60 = vadd.f32 %v1449_v45, %v333_v57 }
 0x11f   :  { %1754 = vmatmul.bf16.vlgmr.msrb.gmra.mxu2 %v1535_v44 }
 0x120   :  { %v1438_v34 = vpop.f32.mrf.mxu1 }
 0x122   :  { %v1462_v49 = vpop.f32.mrf.mxu3 }
 0x123   :  { %v1463_v1 = vadd.f32 %v1462_v49, %v1450_v60 }
 0x125   :  { %v1451_v50 = vpop.f32.mrf.mxu2 }
 0x12a   :  { %v1464_v52 = vpop.f32.mrf.mxu3 }
 0x136   :  { %v1475_v54 = vpop.f32.mrf.mxu0 }
 0x137   :  { %v1476_v4 = vadd.f32 %v1475_v54, %v1463_v1 }
 0x138   :  { %v1488_v56 = vpop.f32.mrf.mxu1 }
 0x139   :  { %v1489_v5 = vadd.f32 %v1488_v56, %v1476_v4 }
 0x13d   :  { %v1501_v59 = vpop.f32.mrf.mxu2 }
 0x13e   :  { %v1477_v61 = vpop.f32.mrf.mxu0  ;;  %v1502_v7 = vadd.f32 %v1501_v59, %v1489_v5 }
 0x140   :  { %v1490_v62 = vpop.f32.mrf.mxu1 }
 0x142   :  { %v1514_v2 = vpop.f32.mrf.mxu3 }
 0x143   :  { %v1515_v8 = vadd.f32 %v1514_v2, %v1502_v7 }
 0x145   :  { %v1503_v3 = vpop.f32.mrf.mxu2 }
 0x14a   :  { %v1516_v6 = vpop.f32.mrf.mxu3 }
 0x156   :  { %v1527_v9 = vpop.f32.mrf.mxu0 }
 0x157   :  { %v1528_v11 = vadd.f32 %v1527_v9, %v1515_v8 }
 0x159   :  { %v1533_v12 = vmax.f32 %v1528_v11, 0.0 }
 0x15b   :  { %v1536_v13 = vpack.c.bf16 %v1533_v12, %v1533_v12 }
 0x15d   :  { %1767 = vmatmul.bf16.vlgmr.msrb.gmra.mxu3 %v1536_v13 }
 0x15e   :  { %v1529_v14 = vpop.f32.mrf.mxu0 }
 0x161   :  { %v1742_v15 = vpop.f32.mrf.mxu1 }
 0x162   :  { %v1743_v25 = vadd.f32 %v2885_v24, %v1742_v15 }
 0x169   :  { %v1744_v46 = vpop.f32.mrf.mxu1 }
 0x1a2   :  { %v1755_v63 = vpop.f32.mrf.mxu2 }
 0x1a3   :  { %v1756_v27 = vadd.f32 %v1755_v63, %v1743_v25 }
 0x1aa   :  { %v1757_v21 = vpop.f32.mrf.mxu2 }
 0x1e0   :  { %v1768_v28 = vpop.f32.mrf.mxu3 }
 0x1e1   :  { %v1769_v30 = vadd.f32 %v1768_v28, %v1756_v27 }
 0x1e3   :  { %v1772_v31 = vmax.f32 %v1769_v30, 0.0 }
 0x1e5   :  { %v1773_v32 = vpack.c.bf16 %v1772_v31, %v1772_v31 }
 0x1e7   :  { %1850 = vmatmul.bf16.vlgmr.msra.gmra.mxu0 %v1773_v32 }
 0x1e8   :  { %v1770_v33 = vpop.f32.mrf.mxu3 }
 0x264   :  { %v1851_v36 = vpop.f32.mrf.mxu0 }
 0x265   :  { %v1852_v37 = vadd.f32 %v2886_v35, %v1851_v36 }
 0x267   :  { %1855 = vst [vmem:[#allocation11] sm:$0xff] %v1852_v37 }
 0x268   :  { %1866 = dma.vmem_to_hbm [thread:$0]  %s1862_s30, 128, %s1864_s10, [#allocation4]  }
 0x26c   :  { %v1853_v38 = vpop.f32.mrf.mxu0 }
 0x26d   :  { %3037 = dma.done.wait [#allocation4], 128  }
 0x26e   :  { %3038 = vsyncadd [#allocation4], 4294967168 }
 0x26f   :  { %1871 = vsyncpa [#allocation3], 1 }
 0x270   :  { %1872 = vsyncpa [#allocation6], 1 }
 0x271   :  { %1873 = vsyncpa [#allocation9], 1 }
 0x272   :  { %1874 = vsyncpa [#allocation4], 1 }

</bundles_post_ra>
